<compile_context>
chip_gen: v7x
topology: tpu7x:2x2x1
jax: 0.10.0
libtpu: 0.0.40
codegen_flags: <defaults>
</compile_context>

<pallas_src>
import functools

import jax
import jax.numpy as jnp
from jax import lax
from jax.experimental import pallas as pl
from jax.experimental.pallas import tpu as pltpu


_UNROLL_T_MAX = 8   # fully unroll the serial recurrence only for very short T


def _round_up(v, m):
    return ((v + m - 1) // m) * m


def _sigmoid(z):
    # tanh identity: one EUP push per sigmoid (vs. exp + reciprocal) and exact
    # agreement with torch.sigmoid up to rounding.
    return 0.5 * jnp.tanh(0.5 * z) + 0.5


def _lstm_cell(gates, c_prev, H):
    # PyTorch gate order: input, forget, cell (g), output.  H = 128 keeps every
    # slice lane-aligned (whole 128-lane vregs), so the slicing below is free.
    i = _sigmoid(gates[:, 0 * H:1 * H])
    f = _sigmoid(gates[:, 1 * H:2 * H])
    g = jnp.tanh(gates[:, 2 * H:3 * H])
    o = _sigmoid(gates[:, 3 * H:4 * H])
    c_new = f * c_prev + i * g
    h_new = o * jnp.tanh(c_new)
    return h_new, c_new


def bilstm_fc_kernel(x_ref, wih_f_ref, whh_f_ref, b_f_ref,
                     wih_b_ref, b_b_ref,
                     wfc_f_ref, wfc_b_ref, bfc_ref,
                     out_ref, xg_ref):
    T, TB, Dp = x_ref.shape           # time-major batch tile (D padded to 128)
    H = whh_f_ref.shape[0]            # W_hh is pre-transposed to (H, 4H)

    x = x_ref[...]                    # (T, TB, Dp)  bf16
    whh_f = whh_f_ref[...]            # (H, 4H)      bf16

    # ---- hoisted input projection: ONE big-M matmul on the MXU ----
    # (T*TB, Dp) @ (Dp, 4H) -> f32, bias pre-added, staged in a VMEM scratch so
    # the serial recurrence below only does the (TB, H) @ (H, 4H) step + gates.
    xg_ref[...] = (jnp.dot(x.reshape(T * TB, Dp), wih_f_ref[...],
                           preferred_element_type=jnp.float32)
                   + b_f_ref[...])

    h0 = jnp.zeros((TB, H), jnp.float32)
    c0 = jnp.zeros((TB, H), jnp.float32)

    def step(xg_t, h, c):
        gates = xg_t + jnp.dot(h.astype(whh_f.dtype), whh_f,
                               preferred_element_type=jnp.float32)
        return _lstm_cell(gates, c, H)

    if T <= _UNROLL_T_MAX:
        # Short sequences: full unroll with static scratch slices.
        h, c = h0, c0
        for t in range(T):
            h, c = step(xg_ref[pl.ds(t * TB, TB), :], h, c)
        h_fwd = h
    else:
        # Longer sequences: modest unroll keeps vreg pressure / spills bounded.
        def body(t, carry):
            h, c = carry
            off = pl.multiple_of(t * TB, TB)
            return step(xg_ref[pl.ds(off, TB), :], h, c)
        h_fwd, _ = lax.fori_loop(0, T, body, (h0, c0), unroll=2)

    # ---- reverse direction ----
    # The module only reads out[:, -1, :]; for the reverse direction that is the
    # state after processing ONLY x[:, T-1, :] from zeros -> one cell step, and
    # its h @ W_hh term is identically zero (W_hh_bwd is never needed).
    gates_b = (jnp.dot(x[T - 1], wih_b_ref[...],
                       preferred_element_type=jnp.float32) + b_b_ref[...])
    h_bwd, _ = _lstm_cell(gates_b, c0, H)

    # ---- linear head: two accumulating matmuls (no (TB, 2H) concat) ----
    out = (jnp.dot(h_fwd.astype(wfc_f_ref.dtype), wfc_f_ref[...],
                   preferred_element_type=jnp.float32)
           + jnp.dot(h_bwd.astype(wfc_b_ref.dtype), wfc_b_ref[...],
                     preferred_element_type=jnp.float32)
           + bfc_ref[...])
    out_ref[...] = out.astype(out_ref.dtype)


def _pick_batch_tile(B):
    """Per-generation default batch tile (evaluated outside jit)."""
    kind = ""
    try:
        kind = jax.devices()[0].device_kind.lower()
    except Exception:
        pass
    b16 = _round_up(max(B, 16), 16)
    if "v5" in kind:
        cap = 128                       # v5e MXU is 128-wide: TB=128 already fills M
    elif "v6" in kind:
        cap = 256                       # v6e 2x256^2 MXU: 256 rows fills M
    else:
        # v7x (2 TCs) / unknown: cap at 256, but guarantee >= 2 grid tiles so the
        # "parallel" batch axis actually shards across both TensorCores.
        cap = 256
        if b16 > 16:
            cap = min(cap, max(16, _round_up(b16 // 2, 16)))
    return min(cap, b16)


def _vmem_limit_bytes(T, TB, Dp, H, Cp):
    x_tile = 2 * T * TB * Dp * 2                 # bf16 x tile, double-buffered
    xg = T * TB * 4 * H * 4                      # f32 projection scratch
    weights = 2 * (2 * Dp * 4 * H * 2            # W_ih fwd/bwd
                   + H * 4 * H * 2               # W_hh fwd
                   + 2 * H * Cp * 2              # W_fc fwd/bwd
                   + (2 * 4 * H + Cp) * 4)       # biases
    out = 2 * TB * Cp * 4                        # output tile, double-buffered
    need = x_tile + xg + weights + out + (8 << 20)   # headroom for gates/temps
    # Clamp to 64 MiB: safe on every generation (v7x physical VMEM is 64 MiB).
    # TODO(synk): chunk the hoisted projection over time if very long T ever
    # pushes `need` past this clamp (not reachable at the module's shapes).
    return int(max(24 << 20, min(need, 64 << 20)))


@functools.partial(jax.jit, static_argnames=("batch_tile",))
def _bilstm_fc(x, params, *, batch_tile):
    B, T, D = x.shape
    H = params["w_hh_f"].shape[1]     # torch layout: (4H, H)
    C = params["w_fc"].shape[0]

    # --- host-side layout prep (cheap XLA ops; keeps the serial path clean) ---
    Dp = _round_up(max(D, 128), 128)  # pad features to a full 128-lane vreg
    Cp = _round_up(max(C, 128), 128)  # lane-dense head output

    wih_f = jnp.zeros((Dp, 4 * H), jnp.bfloat16).at[:D].set(
        params["w_ih_f"].T.astype(jnp.bfloat16))
    wih_b = jnp.zeros((Dp, 4 * H), jnp.bfloat16).at[:D].set(
        params["w_ih_b"].T.astype(jnp.bfloat16))
    whh_f = params["w_hh_f"].T.astype(jnp.bfloat16)                  # (H, 4H)
    b_f = params["b_f"].reshape(1, 4 * H).astype(jnp.float32)
    b_b = params["b_b"].reshape(1, 4 * H).astype(jnp.float32)
    # NOTE: params["w_hh_b"] is intentionally unused (algebraically zero here).

    wfc_t = params["w_fc"].T.astype(jnp.bfloat16)                    # (2H, C)
    wfc_f = jnp.zeros((H, Cp), jnp.bfloat16).at[:, :C].set(wfc_t[:H])
    wfc_b = jnp.zeros((H, Cp), jnp.bfloat16).at[:, :C].set(wfc_t[H:])
    bfc = jnp.zeros((1, Cp), jnp.float32).at[:, :C].set(
        params["b_fc"].reshape(1, C).astype(jnp.float32))

    # Batch tile: bf16 sublane quantum is 16.
    TB = _round_up(min(batch_tile, _round_up(B, 16)), 16)
    Bp = _round_up(B, TB)
    grid = (Bp // TB,)

    # Time-major, batch- and feature-padded, bf16 input: the per-timestep slice
    # inside the kernel is a leading-axis offset; x loads are unmasked.
    xt = jnp.transpose(x, (1, 0, 2)).astype(jnp.bfloat16)            # (T, B, D)
    xt = jnp.pad(xt, ((0, 0), (0, Bp - B), (0, Dp - D)))             # (T, Bp, Dp)

    cost = pl.CostEstimate(
        flops=int(2 * Bp * (T * Dp * 4 * H          # fwd input projection
                            + T * H * 4 * H         # fwd recurrence
                            + Dp * 4 * H            # bwd single step
                            + 2 * H * Cp)),         # fc head
        transcendentals=int(Bp * (T + 1) * 5 * H),  # 3 sigmoid(tanh) + 2 tanh / step
        bytes_accessed=int(xt.size * 2
                           + (wih_f.size + wih_b.size + whh_f.size
                              + wfc_f.size + wfc_b.size) * 2
                           + (b_f.size + b_b.size + bfc.size) * 4
                           + Bp * Cp * 4),
    )

    out_padded = pl.pallas_call(
        bilstm_fc_kernel,
        out_shape=jax.ShapeDtypeStruct((Bp, Cp), jnp.float32),
        grid_spec=pltpu.PrefetchScalarGridSpec(
            num_scalar_prefetch=0,
            grid=grid,
            in_specs=[
                pl.BlockSpec((T, TB, Dp), lambda i: (0, i, 0)),   # x (time-major tile)
                pl.BlockSpec((Dp, 4 * H), lambda i: (0, 0)),      # W_ih fwd
                pl.BlockSpec((H, 4 * H), lambda i: (0, 0)),       # W_hh fwd
                pl.BlockSpec((1, 4 * H), lambda i: (0, 0)),       # b fwd
                pl.BlockSpec((Dp, 4 * H), lambda i: (0, 0)),      # W_ih bwd
                pl.BlockSpec((1, 4 * H), lambda i: (0, 0)),       # b bwd
                pl.BlockSpec((H, Cp), lambda i: (0, 0)),          # W_fc (fwd half)
                pl.BlockSpec((H, Cp), lambda i: (0, 0)),          # W_fc (bwd half)
                pl.BlockSpec((1, Cp), lambda i: (0, 0)),          # b_fc
            ],
            out_specs=pl.BlockSpec((TB, Cp), lambda i: (i, 0)),
            scratch_shapes=[pltpu.VMEM((T * TB, 4 * H), jnp.float32)],  # xg
        ),
        compiler_params=pltpu.CompilerParams(
            dimension_semantics=("parallel",),      # batch tiles are independent
            vmem_limit_bytes=_vmem_limit_bytes(T, TB, Dp, H, Cp),
        ),
        cost_estimate=cost,
    )(xt, wih_f, whh_f, b_f, wih_b, b_b, wfc_f, wfc_b, bfc)

    return out_padded[:B, :C]


def bidirectional_lstm_action_recognition(x, params, batch_tile=None):
    """x: (B, T, D) float32, batch_first (as in the PyTorch module) -> (B, C) logits."""
    if batch_tile is None:
        batch_tile = _pick_batch_tile(int(x.shape[0]))
    return _bilstm_fc(x, params, batch_tile=int(batch_tile))


def init_params(key, input_size, hidden_size, num_classes):
    """Deterministic init mirroring the PyTorch parameter shapes (uniform(-1/sqrt(H), 1/sqrt(H)))."""
    H, D, C = hidden_size, input_size, num_classes
    keys = jax.random.split(key, 10)
    k = 1.0 / float(H) ** 0.5

    def u(kk, shape):
        return jax.random.uniform(kk, shape, jnp.float32, -k, k)

    return {
        "w_ih_f": u(keys[0], (4 * H, D)),
        "w_hh_f": u(keys[1], (4 * H, H)),
        "b_f": u(keys[2], (4 * H,)) + u(keys[3], (4 * H,)),     # b_ih + b_hh fused
        "w_ih_b": u(keys[4], (4 * H, D)),
        "w_hh_b": u(keys[5], (4 * H, H)),                        # present, unused by the head
        "b_b": u(keys[6], (4 * H,)) + u(keys[7], (4 * H,)),
        "w_fc": u(keys[8], (C, 2 * H)),
        "b_fc": u(keys[9], (C,)),
    }


if __name__ == "__main__":
    # Shapes implied by the module: input_size = 3*14*2 = 84, hidden_size = 128,
    # num_classes = 7; small batch / sequence for the demo.
    B, T = 2, 8
    D = 3 * 14 * 2      # 84
    H = 128
    C = 7

    root = jax.random.PRNGKey(0)
    key_x, key_p = jax.random.split(root)
    params = init_params(key_p, D, H, C)
    x = jax.random.normal(key_x, (B, T, D), jnp.float32)

    logits = bidirectional_lstm_action_recognition(x, params)
    jax.block_until_ready(logits)
    assert logits.shape == (B, C) and logits.dtype == jnp.float32
    assert bool(jnp.all(jnp.isfinite(logits)))
    print("KERNEL_OK")
</pallas_src>

<mosaic_0001>
module attributes {stable_mosaic.version = 11 : i64} {
  func.func @bilstm_fc_kernel(%arg0: i32, %arg1: memref<8x16x128xbf16, #tpu.memory_space<vmem>>, %arg2: memref<128x512xbf16, #tpu.memory_space<vmem>>, %arg3: memref<128x512xbf16, #tpu.memory_space<vmem>>, %arg4: memref<1x512xf32, #tpu.memory_space<vmem>>, %arg5: memref<128x512xbf16, #tpu.memory_space<vmem>>, %arg6: memref<1x512xf32, #tpu.memory_space<vmem>>, %arg7: memref<128x128xbf16, #tpu.memory_space<vmem>>, %arg8: memref<128x128xbf16, #tpu.memory_space<vmem>>, %arg9: memref<1x128xf32, #tpu.memory_space<vmem>>, %arg10: memref<16x128xf32, #tpu.memory_space<vmem>>, %arg11: memref<128x512xf32, #tpu.memory_space<vmem>>) attributes {dimension_semantics = [#tpu.dimension_semantics<parallel>], iteration_bounds = array<i64: 1>, scalar_prefetch = 0 : i64, scratch_operands = 1 : i64, tpu.core_type = #tpu.core_type<tc>, window_params = [{transform_indices = @transform_0, window_bounds = array<i64: 8, 16, 128>}, {pipeline_mode = #tpu.pipeline_mode<synchronous>, transform_indices = @transform_1, window_bounds = array<i64: 128, 512>}, {pipeline_mode = #tpu.pipeline_mode<synchronous>, transform_indices = @transform_2, window_bounds = array<i64: 128, 512>}, {pipeline_mode = #tpu.pipeline_mode<synchronous>, transform_indices = @transform_3, window_bounds = array<i64: 1, 512>}, {pipeline_mode = #tpu.pipeline_mode<synchronous>, transform_indices = @transform_4, window_bounds = array<i64: 128, 512>}, {pipeline_mode = #tpu.pipeline_mode<synchronous>, transform_indices = @transform_5, window_bounds = array<i64: 1, 512>}, {pipeline_mode = #tpu.pipeline_mode<synchronous>, transform_indices = @transform_6, window_bounds = array<i64: 128, 128>}, {pipeline_mode = #tpu.pipeline_mode<synchronous>, transform_indices = @transform_7, window_bounds = array<i64: 128, 128>}, {pipeline_mode = #tpu.pipeline_mode<synchronous>, transform_indices = @transform_8, window_bounds = array<i64: 1, 128>}, {transform_indices = @transform_9, window_bounds = array<i64: 16, 128>}]} {
    %c0 = arith.constant 0 : index
    %c0_0 = arith.constant 0 : index
    %c0_1 = arith.constant 0 : index
    %0 = vector.load %arg1[%c0, %c0_0, %c0_1] : memref<8x16x128xbf16, #tpu.memory_space<vmem>>, vector<8x16x128xbf16>
    %c0_2 = arith.constant 0 : index
    %c0_3 = arith.constant 0 : index
    %1 = vector.load %arg3[%c0_2, %c0_3] : memref<128x512xbf16, #tpu.memory_space<vmem>>, vector<128x512xbf16>
    %2 = vector.shape_cast %0 : vector<8x16x128xbf16> to vector<128x128xbf16>
    %c0_4 = arith.constant 0 : index
    %c0_5 = arith.constant 0 : index
    %3 = vector.load %arg2[%c0_4, %c0_5] : memref<128x512xbf16, #tpu.memory_space<vmem>>, vector<128x512xbf16>
    %cst = arith.constant dense<0.000000e+00> : vector<128x512xf32>
    %4 = tpu.matmul %2, %3, %cst {dimension_numbers = #tpu.dot_dimension_numbers<[1], [0], [0], [1], [0, 0, 1, 1], [], []>} : vector<128x128xbf16>, vector<128x512xbf16>, vector<128x512xf32> -> vector<128x512xf32>
    %c0_6 = arith.constant 0 : index
    %c0_7 = arith.constant 0 : index
    %5 = vector.load %arg4[%c0_6, %c0_7] : memref<1x512xf32, #tpu.memory_space<vmem>>, vector<1x512xf32>
    %6 = vector.broadcast %5 : vector<1x512xf32> to vector<128x512xf32>
    %7 = arith.addf %4, %6 : vector<128x512xf32>
    %c0_8 = arith.constant 0 : index
    %c0_9 = arith.constant 0 : index
    %8 = vector.load %arg11[%c0_8, %c0_9] : memref<128x512xf32, #tpu.memory_space<vmem>>, vector<128x512xf32>
    tpu.vector_store %arg11[%c0_8, %c0_9], %7 {strides = array<i32>} : memref<128x512xf32, #tpu.memory_space<vmem>>, vector<128x512xf32>,
    %cst_10 = arith.constant 0.000000e+00 : f32
    %9 = vector.broadcast %cst_10 : f32 to vector<16x128xf32>
    %cst_11 = arith.constant 0.000000e+00 : f32
    %10 = vector.broadcast %cst_11 : f32 to vector<16x128xf32>
    %c0_12 = arith.constant 0 : index
    %c0_13 = arith.constant 0 : index
    %11 = vector.load %arg11[%c0_12, %c0_13] : memref<128x512xf32, #tpu.memory_space<vmem>>, vector<16x512xf32>
    %12 = arith.truncf %9 : vector<16x128xf32> to vector<16x128xbf16>
    %cst_14 = arith.constant dense<0.000000e+00> : vector<16x512xf32>
    %13 = tpu.matmul %12, %1, %cst_14 {dimension_numbers = #tpu.dot_dimension_numbers<[1], [0], [0], [1], [0, 0, 1, 1], [], []>} : vector<16x128xbf16>, vector<128x512xbf16>, vector<16x512xf32> -> vector<16x512xf32>
    %14 = arith.addf %11, %13 : vector<16x512xf32>
    %15 = vector.extract_strided_slice %14 {offsets = [0, 0], sizes = [16, 128], strides = [1, 1]} : vector<16x512xf32> to vector<16x128xf32>
    %cst_15 = arith.constant 5.000000e-01 : f32
    %16 = vector.broadcast %cst_15 : f32 to vector<16x128xf32>
    %17 = arith.mulf %16, %15 : vector<16x128xf32>
    %18 = math.tanh %17 : vector<16x128xf32>
    %cst_16 = arith.constant 5.000000e-01 : f32
    %19 = vector.broadcast %cst_16 : f32 to vector<16x128xf32>
    %20 = arith.mulf %19, %18 : vector<16x128xf32>
    %cst_17 = arith.constant 5.000000e-01 : f32
    %21 = vector.broadcast %cst_17 : f32 to vector<16x128xf32>
    %22 = arith.addf %20, %21 : vector<16x128xf32>
    %23 = vector.extract_strided_slice %14 {offsets = [0, 128], sizes = [16, 128], strides = [1, 1]} : vector<16x512xf32> to vector<16x128xf32>
    %cst_18 = arith.constant 5.000000e-01 : f32
    %24 = vector.broadcast %cst_18 : f32 to vector<16x128xf32>
    %25 = arith.mulf %24, %23 : vector<16x128xf32>
    %26 = math.tanh %25 : vector<16x128xf32>
    %cst_19 = arith.constant 5.000000e-01 : f32
    %27 = vector.broadcast %cst_19 : f32 to vector<16x128xf32>
    %28 = arith.mulf %27, %26 : vector<16x128xf32>
    %cst_20 = arith.constant 5.000000e-01 : f32
    %29 = vector.broadcast %cst_20 : f32 to vector<16x128xf32>
    %30 = arith.addf %28, %29 : vector<16x128xf32>
    %31 = vector.extract_strided_slice %14 {offsets = [0, 256], sizes = [16, 128], strides = [1, 1]} : vector<16x512xf32> to vector<16x128xf32>
    %32 = math.tanh %31 : vector<16x128xf32>
    %33 = vector.extract_strided_slice %14 {offsets = [0, 384], sizes = [16, 128], strides = [1, 1]} : vector<16x512xf32> to vector<16x128xf32>
    %cst_21 = arith.constant 5.000000e-01 : f32
    %34 = vector.broadcast %cst_21 : f32 to vector<16x128xf32>
    %35 = arith.mulf %34, %33 : vector<16x128xf32>
    %36 = math.tanh %35 : vector<16x128xf32>
    %cst_22 = arith.constant 5.000000e-01 : f32
    %37 = vector.broadcast %cst_22 : f32 to vector<16x128xf32>
    %38 = arith.mulf %37, %36 : vector<16x128xf32>
    %cst_23 = arith.constant 5.000000e-01 : f32
    %39 = vector.broadcast %cst_23 : f32 to vector<16x128xf32>
    %40 = arith.addf %38, %39 : vector<16x128xf32>
    %41 = arith.mulf %30, %10 : vector<16x128xf32>
    %42 = arith.mulf %22, %32 : vector<16x128xf32>
    %43 = arith.addf %41, %42 : vector<16x128xf32>
    %44 = math.tanh %43 : vector<16x128xf32>
    %45 = arith.mulf %40, %44 : vector<16x128xf32>
    %c16 = arith.constant 16 : index
    %c0_24 = arith.constant 0 : index
    %46 = vector.load %arg11[%c16, %c0_24] : memref<128x512xf32, #tpu.memory_space<vmem>>, vector<16x512xf32>
    %47 = arith.truncf %45 : vector<16x128xf32> to vector<16x128xbf16>
    %cst_25 = arith.constant dense<0.000000e+00> : vector<16x512xf32>
    %48 = tpu.matmul %47, %1, %cst_25 {dimension_numbers = #tpu.dot_dimension_numbers<[1], [0], [0], [1], [0, 0, 1, 1], [], []>} : vector<16x128xbf16>, vector<128x512xbf16>, vector<16x512xf32> -> vector<16x512xf32>
    %49 = arith.addf %46, %48 : vector<16x512xf32>
    %50 = vector.extract_strided_slice %49 {offsets = [0, 0], sizes = [16, 128], strides = [1, 1]} : vector<16x512xf32> to vector<16x128xf32>
    %cst_26 = arith.constant 5.000000e-01 : f32
    %51 = vector.broadcast %cst_26 : f32 to vector<16x128xf32>
    %52 = arith.mulf %51, %50 : vector<16x128xf32>
    %53 = math.tanh %52 : vector<16x128xf32>
    %cst_27 = arith.constant 5.000000e-01 : f32
    %54 = vector.broadcast %cst_27 : f32 to vector<16x128xf32>
    %55 = arith.mulf %54, %53 : vector<16x128xf32>
    %cst_28 = arith.constant 5.000000e-01 : f32
    %56 = vector.broadcast %cst_28 : f32 to vector<16x128xf32>
    %57 = arith.addf %55, %56 : vector<16x128xf32>
    %58 = vector.extract_strided_slice %49 {offsets = [0, 128], sizes = [16, 128], strides = [1, 1]} : vector<16x512xf32> to vector<16x128xf32>
    %cst_29 = arith.constant 5.000000e-01 : f32
    %59 = vector.broadcast %cst_29 : f32 to vector<16x128xf32>
    %60 = arith.mulf %59, %58 : vector<16x128xf32>
    %61 = math.tanh %60 : vector<16x128xf32>
    %cst_30 = arith.constant 5.000000e-01 : f32
    %62 = vector.broadcast %cst_30 : f32 to vector<16x128xf32>
    %63 = arith.mulf %62, %61 : vector<16x128xf32>
    %cst_31 = arith.constant 5.000000e-01 : f32
    %64 = vector.broadcast %cst_31 : f32 to vector<16x128xf32>
    %65 = arith.addf %63, %64 : vector<16x128xf32>
    %66 = vector.extract_strided_slice %49 {offsets = [0, 256], sizes = [16, 128], strides = [1, 1]} : vector<16x512xf32> to vector<16x128xf32>
    %67 = math.tanh %66 : vector<16x128xf32>
    %68 = vector.extract_strided_slice %49 {offsets = [0, 384], sizes = [16, 128], strides = [1, 1]} : vector<16x512xf32> to vector<16x128xf32>
    %cst_32 = arith.constant 5.000000e-01 : f32
    %69 = vector.broadcast %cst_32 : f32 to vector<16x128xf32>
    %70 = arith.mulf %69, %68 : vector<16x128xf32>
    %71 = math.tanh %70 : vector<16x128xf32>
    %cst_33 = arith.constant 5.000000e-01 : f32
    %72 = vector.broadcast %cst_33 : f32 to vector<16x128xf32>
    %73 = arith.mulf %72, %71 : vector<16x128xf32>
    %cst_34 = arith.constant 5.000000e-01 : f32
    %74 = vector.broadcast %cst_34 : f32 to vector<16x128xf32>
    %75 = arith.addf %73, %74 : vector<16x128xf32>
    %76 = arith.mulf %65, %43 : vector<16x128xf32>
    %77 = arith.mulf %57, %67 : vector<16x128xf32>
    %78 = arith.addf %76, %77 : vector<16x128xf32>
    %79 = math.tanh %78 : vector<16x128xf32>
    %80 = arith.mulf %75, %79 : vector<16x128xf32>
    %c32 = arith.constant 32 : index
    %c0_35 = arith.constant 0 : index
    %81 = vector.load %arg11[%c32, %c0_35] : memref<128x512xf32, #tpu.memory_space<vmem>>, vector<16x512xf32>
    %82 = arith.truncf %80 : vector<16x128xf32> to vector<16x128xbf16>
    %cst_36 = arith.constant dense<0.000000e+00> : vector<16x512xf32>
    %83 = tpu.matmul %82, %1, %cst_36 {dimension_numbers = #tpu.dot_dimension_numbers<[1], [0], [0], [1], [0, 0, 1, 1], [], []>} : vector<16x128xbf16>, vector<128x512xbf16>, vector<16x512xf32> -> vector<16x512xf32>
    %84 = arith.addf %81, %83 : vector<16x512xf32>
    %85 = vector.extract_strided_slice %84 {offsets = [0, 0], sizes = [16, 128], strides = [1, 1]} : vector<16x512xf32> to vector<16x128xf32>
    %cst_37 = arith.constant 5.000000e-01 : f32
    %86 = vector.broadcast %cst_37 : f32 to vector<16x128xf32>
    %87 = arith.mulf %86, %85 : vector<16x128xf32>
    %88 = math.tanh %87 : vector<16x128xf32>
    %cst_38 = arith.constant 5.000000e-01 : f32
    %89 = vector.broadcast %cst_38 : f32 to vector<16x128xf32>
    %90 = arith.mulf %89, %88 : vector<16x128xf32>
    %cst_39 = arith.constant 5.000000e-01 : f32
    %91 = vector.broadcast %cst_39 : f32 to vector<16x128xf32>
    %92 = arith.addf %90, %91 : vector<16x128xf32>
    %93 = vector.extract_strided_slice %84 {offsets = [0, 128], sizes = [16, 128], strides = [1, 1]} : vector<16x512xf32> to vector<16x128xf32>
    %cst_40 = arith.constant 5.000000e-01 : f32
    %94 = vector.broadcast %cst_40 : f32 to vector<16x128xf32>
    %95 = arith.mulf %94, %93 : vector<16x128xf32>
    %96 = math.tanh %95 : vector<16x128xf32>
    %cst_41 = arith.constant 5.000000e-01 : f32
    %97 = vector.broadcast %cst_41 : f32 to vector<16x128xf32>
    %98 = arith.mulf %97, %96 : vector<16x128xf32>
    %cst_42 = arith.constant 5.000000e-01 : f32
    %99 = vector.broadcast %cst_42 : f32 to vector<16x128xf32>
    %100 = arith.addf %98, %99 : vector<16x128xf32>
    %101 = vector.extract_strided_slice %84 {offsets = [0, 256], sizes = [16, 128], strides = [1, 1]} : vector<16x512xf32> to vector<16x128xf32>
    %102 = math.tanh %101 : vector<16x128xf32>
    %103 = vector.extract_strided_slice %84 {offsets = [0, 384], sizes = [16, 128], strides = [1, 1]} : vector<16x512xf32> to vector<16x128xf32>
    %cst_43 = arith.constant 5.000000e-01 : f32
    %104 = vector.broadcast %cst_43 : f32 to vector<16x128xf32>
    %105 = arith.mulf %104, %103 : vector<16x128xf32>
    %106 = math.tanh %105 : vector<16x128xf32>
    %cst_44 = arith.constant 5.000000e-01 : f32
    %107 = vector.broadcast %cst_44 : f32 to vector<16x128xf32>
    %108 = arith.mulf %107, %106 : vector<16x128xf32>
    %cst_45 = arith.constant 5.000000e-01 : f32
    %109 = vector.broadcast %cst_45 : f32 to vector<16x128xf32>
    %110 = arith.addf %108, %109 : vector<16x128xf32>
    %111 = arith.mulf %100, %78 : vector<16x128xf32>
    %112 = arith.mulf %92, %102 : vector<16x128xf32>
    %113 = arith.addf %111, %112 : vector<16x128xf32>
    %114 = math.tanh %113 : vector<16x128xf32>
    %115 = arith.mulf %110, %114 : vector<16x128xf32>
    %c48 = arith.constant 48 : index
    %c0_46 = arith.constant 0 : index
    %116 = vector.load %arg11[%c48, %c0_46] : memref<128x512xf32, #tpu.memory_space<vmem>>, vector<16x512xf32>
    %117 = arith.truncf %115 : vector<16x128xf32> to vector<16x128xbf16>
    %cst_47 = arith.constant dense<0.000000e+00> : vector<16x512xf32>
    %118 = tpu.matmul %117, %1, %cst_47 {dimension_numbers = #tpu.dot_dimension_numbers<[1], [0], [0], [1], [0, 0, 1, 1], [], []>} : vector<16x128xbf16>, vector<128x512xbf16>, vector<16x512xf32> -> vector<16x512xf32>
    %119 = arith.addf %116, %118 : vector<16x512xf32>
    %120 = vector.extract_strided_slice %119 {offsets = [0, 0], sizes = [16, 128], strides = [1, 1]} : vector<16x512xf32> to vector<16x128xf32>
    %cst_48 = arith.constant 5.000000e-01 : f32
    %121 = vector.broadcast %cst_48 : f32 to vector<16x128xf32>
    %122 = arith.mulf %121, %120 : vector<16x128xf32>
    %123 = math.tanh %122 : vector<16x128xf32>
    %cst_49 = arith.constant 5.000000e-01 : f32
    %124 = vector.broadcast %cst_49 : f32 to vector<16x128xf32>
    %125 = arith.mulf %124, %123 : vector<16x128xf32>
    %cst_50 = arith.constant 5.000000e-01 : f32
    %126 = vector.broadcast %cst_50 : f32 to vector<16x128xf32>
    %127 = arith.addf %125, %126 : vector<16x128xf32>
    %128 = vector.extract_strided_slice %119 {offsets = [0, 128], sizes = [16, 128], strides = [1, 1]} : vector<16x512xf32> to vector<16x128xf32>
    %cst_51 = arith.constant 5.000000e-01 : f32
    %129 = vector.broadcast %cst_51 : f32 to vector<16x128xf32>
    %130 = arith.mulf %129, %128 : vector<16x128xf32>
    %131 = math.tanh %130 : vector<16x128xf32>
    %cst_52 = arith.constant 5.000000e-01 : f32
    %132 = vector.broadcast %cst_52 : f32 to vector<16x128xf32>
    %133 = arith.mulf %132, %131 : vector<16x128xf32>
    %cst_53 = arith.constant 5.000000e-01 : f32
    %134 = vector.broadcast %cst_53 : f32 to vector<16x128xf32>
    %135 = arith.addf %133, %134 : vector<16x128xf32>
    %136 = vector.extract_strided_slice %119 {offsets = [0, 256], sizes = [16, 128], strides = [1, 1]} : vector<16x512xf32> to vector<16x128xf32>
    %137 = math.tanh %136 : vector<16x128xf32>
    %138 = vector.extract_strided_slice %119 {offsets = [0, 384], sizes = [16, 128], strides = [1, 1]} : vector<16x512xf32> to vector<16x128xf32>
    %cst_54 = arith.constant 5.000000e-01 : f32
    %139 = vector.broadcast %cst_54 : f32 to vector<16x128xf32>
    %140 = arith.mulf %139, %138 : vector<16x128xf32>
    %141 = math.tanh %140 : vector<16x128xf32>
    %cst_55 = arith.constant 5.000000e-01 : f32
    %142 = vector.broadcast %cst_55 : f32 to vector<16x128xf32>
    %143 = arith.mulf %142, %141 : vector<16x128xf32>
    %cst_56 = arith.constant 5.000000e-01 : f32
    %144 = vector.broadcast %cst_56 : f32 to vector<16x128xf32>
    %145 = arith.addf %143, %144 : vector<16x128xf32>
    %146 = arith.mulf %135, %113 : vector<16x128xf32>
    %147 = arith.mulf %127, %137 : vector<16x128xf32>
    %148 = arith.addf %146, %147 : vector<16x128xf32>
    %149 = math.tanh %148 : vector<16x128xf32>
    %150 = arith.mulf %145, %149 : vector<16x128xf32>
    %c64 = arith.constant 64 : index
    %c0_57 = arith.constant 0 : index
    %151 = vector.load %arg11[%c64, %c0_57] : memref<128x512xf32, #tpu.memory_space<vmem>>, vector<16x512xf32>
    %152 = arith.truncf %150 : vector<16x128xf32> to vector<16x128xbf16>
    %cst_58 = arith.constant dense<0.000000e+00> : vector<16x512xf32>
    %153 = tpu.matmul %152, %1, %cst_58 {dimension_numbers = #tpu.dot_dimension_numbers<[1], [0], [0], [1], [0, 0, 1, 1], [], []>} : vector<16x128xbf16>, vector<128x512xbf16>, vector<16x512xf32> -> vector<16x512xf32>
    %154 = arith.addf %151, %153 : vector<16x512xf32>
    %155 = vector.extract_strided_slice %154 {offsets = [0, 0], sizes = [16, 128], strides = [1, 1]} : vector<16x512xf32> to vector<16x128xf32>
    %cst_59 = arith.constant 5.000000e-01 : f32
    %156 = vector.broadcast %cst_59 : f32 to vector<16x128xf32>
    %157 = arith.mulf %156, %155 : vector<16x128xf32>
    %158 = math.tanh %157 : vector<16x128xf32>
    %cst_60 = arith.constant 5.000000e-01 : f32
    %159 = vector.broadcast %cst_60 : f32 to vector<16x128xf32>
    %160 = arith.mulf %159, %158 : vector<16x128xf32>
    %cst_61 = arith.constant 5.000000e-01 : f32
    %161 = vector.broadcast %cst_61 : f32 to vector<16x128xf32>
    %162 = arith.addf %160, %161 : vector<16x128xf32>
    %163 = vector.extract_strided_slice %154 {offsets = [0, 128], sizes = [16, 128], strides = [1, 1]} : vector<16x512xf32> to vector<16x128xf32>
    %cst_62 = arith.constant 5.000000e-01 : f32
    %164 = vector.broadcast %cst_62 : f32 to vector<16x128xf32>
    %165 = arith.mulf %164, %163 : vector<16x128xf32>
    %166 = math.tanh %165 : vector<16x128xf32>
    %cst_63 = arith.constant 5.000000e-01 : f32
    %167 = vector.broadcast %cst_63 : f32 to vector<16x128xf32>
    %168 = arith.mulf %167, %166 : vector<16x128xf32>
    %cst_64 = arith.constant 5.000000e-01 : f32
    %169 = vector.broadcast %cst_64 : f32 to vector<16x128xf32>
    %170 = arith.addf %168, %169 : vector<16x128xf32>
    %171 = vector.extract_strided_slice %154 {offsets = [0, 256], sizes = [16, 128], strides = [1, 1]} : vector<16x512xf32> to vector<16x128xf32>
    %172 = math.tanh %171 : vector<16x128xf32>
    %173 = vector.extract_strided_slice %154 {offsets = [0, 384], sizes = [16, 128], strides = [1, 1]} : vector<16x512xf32> to vector<16x128xf32>
    %cst_65 = arith.constant 5.000000e-01 : f32
    %174 = vector.broadcast %cst_65 : f32 to vector<16x128xf32>
    %175 = arith.mulf %174, %173 : vector<16x128xf32>
    %176 = math.tanh %175 : vector<16x128xf32>
    %cst_66 = arith.constant 5.000000e-01 : f32
    %177 = vector.broadcast %cst_66 : f32 to vector<16x128xf32>
    %178 = arith.mulf %177, %176 : vector<16x128xf32>
    %cst_67 = arith.constant 5.000000e-01 : f32
    %179 = vector.broadcast %cst_67 : f32 to vector<16x128xf32>
    %180 = arith.addf %178, %179 : vector<16x128xf32>
    %181 = arith.mulf %170, %148 : vector<16x128xf32>
    %182 = arith.mulf %162, %172 : vector<16x128xf32>
    %183 = arith.addf %181, %182 : vector<16x128xf32>
    %184 = math.tanh %183 : vector<16x128xf32>
    %185 = arith.mulf %180, %184 : vector<16x128xf32>
    %c80 = arith.constant 80 : index
    %c0_68 = arith.constant 0 : index
    %186 = vector.load %arg11[%c80, %c0_68] : memref<128x512xf32, #tpu.memory_space<vmem>>, vector<16x512xf32>
    %187 = arith.truncf %185 : vector<16x128xf32> to vector<16x128xbf16>
    %cst_69 = arith.constant dense<0.000000e+00> : vector<16x512xf32>
    %188 = tpu.matmul %187, %1, %cst_69 {dimension_numbers = #tpu.dot_dimension_numbers<[1], [0], [0], [1], [0, 0, 1, 1], [], []>} : vector<16x128xbf16>, vector<128x512xbf16>, vector<16x512xf32> -> vector<16x512xf32>
    %189 = arith.addf %186, %188 : vector<16x512xf32>
    %190 = vector.extract_strided_slice %189 {offsets = [0, 0], sizes = [16, 128], strides = [1, 1]} : vector<16x512xf32> to vector<16x128xf32>
    %cst_70 = arith.constant 5.000000e-01 : f32
    %191 = vector.broadcast %cst_70 : f32 to vector<16x128xf32>
    %192 = arith.mulf %191, %190 : vector<16x128xf32>
    %193 = math.tanh %192 : vector<16x128xf32>
    %cst_71 = arith.constant 5.000000e-01 : f32
    %194 = vector.broadcast %cst_71 : f32 to vector<16x128xf32>
    %195 = arith.mulf %194, %193 : vector<16x128xf32>
    %cst_72 = arith.constant 5.000000e-01 : f32
    %196 = vector.broadcast %cst_72 : f32 to vector<16x128xf32>
    %197 = arith.addf %195, %196 : vector<16x128xf32>
    %198 = vector.extract_strided_slice %189 {offsets = [0, 128], sizes = [16, 128], strides = [1, 1]} : vector<16x512xf32> to vector<16x128xf32>
    %cst_73 = arith.constant 5.000000e-01 : f32
    %199 = vector.broadcast %cst_73 : f32 to vector<16x128xf32>
    %200 = arith.mulf %199, %198 : vector<16x128xf32>
    %201 = math.tanh %200 : vector<16x128xf32>
    %cst_74 = arith.constant 5.000000e-01 : f32
    %202 = vector.broadcast %cst_74 : f32 to vector<16x128xf32>
    %203 = arith.mulf %202, %201 : vector<16x128xf32>
    %cst_75 = arith.constant 5.000000e-01 : f32
    %204 = vector.broadcast %cst_75 : f32 to vector<16x128xf32>
    %205 = arith.addf %203, %204 : vector<16x128xf32>
    %206 = vector.extract_strided_slice %189 {offsets = [0, 256], sizes = [16, 128], strides = [1, 1]} : vector<16x512xf32> to vector<16x128xf32>
    %207 = math.tanh %206 : vector<16x128xf32>
    %208 = vector.extract_strided_slice %189 {offsets = [0, 384], sizes = [16, 128], strides = [1, 1]} : vector<16x512xf32> to vector<16x128xf32>
    %cst_76 = arith.constant 5.000000e-01 : f32
    %209 = vector.broadcast %cst_76 : f32 to vector<16x128xf32>
    %210 = arith.mulf %209, %208 : vector<16x128xf32>
    %211 = math.tanh %210 : vector<16x128xf32>
    %cst_77 = arith.constant 5.000000e-01 : f32
    %212 = vector.broadcast %cst_77 : f32 to vector<16x128xf32>
    %213 = arith.mulf %212, %211 : vector<16x128xf32>
    %cst_78 = arith.constant 5.000000e-01 : f32
    %214 = vector.broadcast %cst_78 : f32 to vector<16x128xf32>
    %215 = arith.addf %213, %214 : vector<16x128xf32>
    %216 = arith.mulf %205, %183 : vector<16x128xf32>
    %217 = arith.mulf %197, %207 : vector<16x128xf32>
    %218 = arith.addf %216, %217 : vector<16x128xf32>
    %219 = math.tanh %218 : vector<16x128xf32>
    %220 = arith.mulf %215, %219 : vector<16x128xf32>
    %c96 = arith.constant 96 : index
    %c0_79 = arith.constant 0 : index
    %221 = vector.load %arg11[%c96, %c0_79] : memref<128x512xf32, #tpu.memory_space<vmem>>, vector<16x512xf32>
    %222 = arith.truncf %220 : vector<16x128xf32> to vector<16x128xbf16>
    %cst_80 = arith.constant dense<0.000000e+00> : vector<16x512xf32>
    %223 = tpu.matmul %222, %1, %cst_80 {dimension_numbers = #tpu.dot_dimension_numbers<[1], [0], [0], [1], [0, 0, 1, 1], [], []>} : vector<16x128xbf16>, vector<128x512xbf16>, vector<16x512xf32> -> vector<16x512xf32>
    %224 = arith.addf %221, %223 : vector<16x512xf32>
    %225 = vector.extract_strided_slice %224 {offsets = [0, 0], sizes = [16, 128], strides = [1, 1]} : vector<16x512xf32> to vector<16x128xf32>
    %cst_81 = arith.constant 5.000000e-01 : f32
    %226 = vector.broadcast %cst_81 : f32 to vector<16x128xf32>
    %227 = arith.mulf %226, %225 : vector<16x128xf32>
    %228 = math.tanh %227 : vector<16x128xf32>
    %cst_82 = arith.constant 5.000000e-01 : f32
    %229 = vector.broadcast %cst_82 : f32 to vector<16x128xf32>
    %230 = arith.mulf %229, %228 : vector<16x128xf32>
    %cst_83 = arith.constant 5.000000e-01 : f32
    %231 = vector.broadcast %cst_83 : f32 to vector<16x128xf32>
    %232 = arith.addf %230, %231 : vector<16x128xf32>
    %233 = vector.extract_strided_slice %224 {offsets = [0, 128], sizes = [16, 128], strides = [1, 1]} : vector<16x512xf32> to vector<16x128xf32>
    %cst_84 = arith.constant 5.000000e-01 : f32
    %234 = vector.broadcast %cst_84 : f32 to vector<16x128xf32>
    %235 = arith.mulf %234, %233 : vector<16x128xf32>
    %236 = math.tanh %235 : vector<16x128xf32>
    %cst_85 = arith.constant 5.000000e-01 : f32
    %237 = vector.broadcast %cst_85 : f32 to vector<16x128xf32>
    %238 = arith.mulf %237, %236 : vector<16x128xf32>
    %cst_86 = arith.constant 5.000000e-01 : f32
    %239 = vector.broadcast %cst_86 : f32 to vector<16x128xf32>
    %240 = arith.addf %238, %239 : vector<16x128xf32>
    %241 = vector.extract_strided_slice %224 {offsets = [0, 256], sizes = [16, 128], strides = [1, 1]} : vector<16x512xf32> to vector<16x128xf32>
    %242 = math.tanh %241 : vector<16x128xf32>
    %243 = vector.extract_strided_slice %224 {offsets = [0, 384], sizes = [16, 128], strides = [1, 1]} : vector<16x512xf32> to vector<16x128xf32>
    %cst_87 = arith.constant 5.000000e-01 : f32
    %244 = vector.broadcast %cst_87 : f32 to vector<16x128xf32>
    %245 = arith.mulf %244, %243 : vector<16x128xf32>
    %246 = math.tanh %245 : vector<16x128xf32>
    %cst_88 = arith.constant 5.000000e-01 : f32
    %247 = vector.broadcast %cst_88 : f32 to vector<16x128xf32>
    %248 = arith.mulf %247, %246 : vector<16x128xf32>
    %cst_89 = arith.constant 5.000000e-01 : f32
    %249 = vector.broadcast %cst_89 : f32 to vector<16x128xf32>
    %250 = arith.addf %248, %249 : vector<16x128xf32>
    %251 = arith.mulf %240, %218 : vector<16x128xf32>
    %252 = arith.mulf %232, %242 : vector<16x128xf32>
    %253 = arith.addf %251, %252 : vector<16x128xf32>
    %254 = math.tanh %253 : vector<16x128xf32>
    %255 = arith.mulf %250, %254 : vector<16x128xf32>
    %c112 = arith.constant 112 : index
    %c0_90 = arith.constant 0 : index
    %256 = vector.load %arg11[%c112, %c0_90] : memref<128x512xf32, #tpu.memory_space<vmem>>, vector<16x512xf32>
    %257 = arith.truncf %255 : vector<16x128xf32> to vector<16x128xbf16>
    %cst_91 = arith.constant dense<0.000000e+00> : vector<16x512xf32>
    %258 = tpu.matmul %257, %1, %cst_91 {dimension_numbers = #tpu.dot_dimension_numbers<[1], [0], [0], [1], [0, 0, 1, 1], [], []>} : vector<16x128xbf16>, vector<128x512xbf16>, vector<16x512xf32> -> vector<16x512xf32>
    %259 = arith.addf %256, %258 : vector<16x512xf32>
    %260 = vector.extract_strided_slice %259 {offsets = [0, 0], sizes = [16, 128], strides = [1, 1]} : vector<16x512xf32> to vector<16x128xf32>
    %cst_92 = arith.constant 5.000000e-01 : f32
    %261 = vector.broadcast %cst_92 : f32 to vector<16x128xf32>
    %262 = arith.mulf %261, %260 : vector<16x128xf32>
    %263 = math.tanh %262 : vector<16x128xf32>
    %cst_93 = arith.constant 5.000000e-01 : f32
    %264 = vector.broadcast %cst_93 : f32 to vector<16x128xf32>
    %265 = arith.mulf %264, %263 : vector<16x128xf32>
    %cst_94 = arith.constant 5.000000e-01 : f32
    %266 = vector.broadcast %cst_94 : f32 to vector<16x128xf32>
    %267 = arith.addf %265, %266 : vector<16x128xf32>
    %268 = vector.extract_strided_slice %259 {offsets = [0, 128], sizes = [16, 128], strides = [1, 1]} : vector<16x512xf32> to vector<16x128xf32>
    %cst_95 = arith.constant 5.000000e-01 : f32
    %269 = vector.broadcast %cst_95 : f32 to vector<16x128xf32>
    %270 = arith.mulf %269, %268 : vector<16x128xf32>
    %271 = math.tanh %270 : vector<16x128xf32>
    %cst_96 = arith.constant 5.000000e-01 : f32
    %272 = vector.broadcast %cst_96 : f32 to vector<16x128xf32>
    %273 = arith.mulf %272, %271 : vector<16x128xf32>
    %cst_97 = arith.constant 5.000000e-01 : f32
    %274 = vector.broadcast %cst_97 : f32 to vector<16x128xf32>
    %275 = arith.addf %273, %274 : vector<16x128xf32>
    %276 = vector.extract_strided_slice %259 {offsets = [0, 256], sizes = [16, 128], strides = [1, 1]} : vector<16x512xf32> to vector<16x128xf32>
    %277 = math.tanh %276 : vector<16x128xf32>
    %278 = vector.extract_strided_slice %259 {offsets = [0, 384], sizes = [16, 128], strides = [1, 1]} : vector<16x512xf32> to vector<16x128xf32>
    %cst_98 = arith.constant 5.000000e-01 : f32
    %279 = vector.broadcast %cst_98 : f32 to vector<16x128xf32>
    %280 = arith.mulf %279, %278 : vector<16x128xf32>
    %281 = math.tanh %280 : vector<16x128xf32>
    %cst_99 = arith.constant 5.000000e-01 : f32
    %282 = vector.broadcast %cst_99 : f32 to vector<16x128xf32>
    %283 = arith.mulf %282, %281 : vector<16x128xf32>
    %cst_100 = arith.constant 5.000000e-01 : f32
    %284 = vector.broadcast %cst_100 : f32 to vector<16x128xf32>
    %285 = arith.addf %283, %284 : vector<16x128xf32>
    %286 = arith.mulf %275, %253 : vector<16x128xf32>
    %287 = arith.mulf %267, %277 : vector<16x128xf32>
    %288 = arith.addf %286, %287 : vector<16x128xf32>
    %289 = math.tanh %288 : vector<16x128xf32>
    %290 = arith.mulf %285, %289 : vector<16x128xf32>
    %291 = vector.extract_strided_slice %0 {offsets = [7, 0, 0], sizes = [1, 16, 128], strides = [1, 1, 1]} : vector<8x16x128xbf16> to vector<1x16x128xbf16>
    %292 = vector.shape_cast %291 : vector<1x16x128xbf16> to vector<16x128xbf16>
    %c0_101 = arith.constant 0 : index
    %c0_102 = arith.constant 0 : index
    %293 = vector.load %arg5[%c0_101, %c0_102] : memref<128x512xbf16, #tpu.memory_space<vmem>>, vector<128x512xbf16>
    %cst_103 = arith.constant dense<0.000000e+00> : vector<16x512xf32>
    %294 = tpu.matmul %292, %293, %cst_103 {dimension_numbers = #tpu.dot_dimension_numbers<[1], [0], [0], [1], [0, 0, 1, 1], [], []>} : vector<16x128xbf16>, vector<128x512xbf16>, vector<16x512xf32> -> vector<16x512xf32>
    %c0_104 = arith.constant 0 : index
    %c0_105 = arith.constant 0 : index
    %295 = vector.load %arg6[%c0_104, %c0_105] : memref<1x512xf32, #tpu.memory_space<vmem>>, vector<1x512xf32>
    %296 = vector.broadcast %295 : vector<1x512xf32> to vector<16x512xf32>
    %297 = arith.addf %294, %296 : vector<16x512xf32>
    %298 = vector.extract_strided_slice %297 {offsets = [0, 0], sizes = [16, 128], strides = [1, 1]} : vector<16x512xf32> to vector<16x128xf32>
    %cst_106 = arith.constant 5.000000e-01 : f32
    %299 = vector.broadcast %cst_106 : f32 to vector<16x128xf32>
    %300 = arith.mulf %299, %298 : vector<16x128xf32>
    %301 = math.tanh %300 : vector<16x128xf32>
    %cst_107 = arith.constant 5.000000e-01 : f32
    %302 = vector.broadcast %cst_107 : f32 to vector<16x128xf32>
    %303 = arith.mulf %302, %301 : vector<16x128xf32>
    %cst_108 = arith.constant 5.000000e-01 : f32
    %304 = vector.broadcast %cst_108 : f32 to vector<16x128xf32>
    %305 = arith.addf %303, %304 : vector<16x128xf32>
    %306 = vector.extract_strided_slice %297 {offsets = [0, 128], sizes = [16, 128], strides = [1, 1]} : vector<16x512xf32> to vector<16x128xf32>
    %cst_109 = arith.constant 5.000000e-01 : f32
    %307 = vector.broadcast %cst_109 : f32 to vector<16x128xf32>
    %308 = arith.mulf %307, %306 : vector<16x128xf32>
    %309 = math.tanh %308 : vector<16x128xf32>
    %cst_110 = arith.constant 5.000000e-01 : f32
    %310 = vector.broadcast %cst_110 : f32 to vector<16x128xf32>
    %311 = arith.mulf %310, %309 : vector<16x128xf32>
    %cst_111 = arith.constant 5.000000e-01 : f32
    %312 = vector.broadcast %cst_111 : f32 to vector<16x128xf32>
    %313 = arith.addf %311, %312 : vector<16x128xf32>
    %314 = vector.extract_strided_slice %297 {offsets = [0, 256], sizes = [16, 128], strides = [1, 1]} : vector<16x512xf32> to vector<16x128xf32>
    %315 = math.tanh %314 : vector<16x128xf32>
    %316 = vector.extract_strided_slice %297 {offsets = [0, 384], sizes = [16, 128], strides = [1, 1]} : vector<16x512xf32> to vector<16x128xf32>
    %cst_112 = arith.constant 5.000000e-01 : f32
    %317 = vector.broadcast %cst_112 : f32 to vector<16x128xf32>
    %318 = arith.mulf %317, %316 : vector<16x128xf32>
    %319 = math.tanh %318 : vector<16x128xf32>
    %cst_113 = arith.constant 5.000000e-01 : f32
    %320 = vector.broadcast %cst_113 : f32 to vector<16x128xf32>
    %321 = arith.mulf %320, %319 : vector<16x128xf32>
    %cst_114 = arith.constant 5.000000e-01 : f32
    %322 = vector.broadcast %cst_114 : f32 to vector<16x128xf32>
    %323 = arith.addf %321, %322 : vector<16x128xf32>
    %324 = arith.mulf %313, %10 : vector<16x128xf32>
    %325 = arith.mulf %305, %315 : vector<16x128xf32>
    %326 = arith.addf %324, %325 : vector<16x128xf32>
    %327 = math.tanh %326 : vector<16x128xf32>
    %328 = arith.mulf %323, %327 : vector<16x128xf32>
    %329 = arith.truncf %290 : vector<16x128xf32> to vector<16x128xbf16>
    %c0_115 = arith.constant 0 : index
    %c0_116 = arith.constant 0 : index
    %330 = vector.load %arg7[%c0_115, %c0_116] : memref<128x128xbf16, #tpu.memory_space<vmem>>, vector<128x128xbf16>
    %cst_117 = arith.constant dense<0.000000e+00> : vector<16x128xf32>
    %331 = tpu.matmul %329, %330, %cst_117 {dimension_numbers = #tpu.dot_dimension_numbers<[1], [0], [0], [1], [0, 0, 1, 1], [], []>} : vector<16x128xbf16>, vector<128x128xbf16>, vector<16x128xf32> -> vector<16x128xf32>
    %332 = arith.truncf %328 : vector<16x128xf32> to vector<16x128xbf16>
    %c0_118 = arith.constant 0 : index
    %c0_119 = arith.constant 0 : index
    %333 = vector.load %arg8[%c0_118, %c0_119] : memref<128x128xbf16, #tpu.memory_space<vmem>>, vector<128x128xbf16>
    %cst_120 = arith.constant dense<0.000000e+00> : vector<16x128xf32>
    %334 = tpu.matmul %332, %333, %cst_120 {dimension_numbers = #tpu.dot_dimension_numbers<[1], [0], [0], [1], [0, 0, 1, 1], [], []>} : vector<16x128xbf16>, vector<128x128xbf16>, vector<16x128xf32> -> vector<16x128xf32>
    %335 = arith.addf %331, %334 : vector<16x128xf32>
    %c0_121 = arith.constant 0 : index
    %c0_122 = arith.constant 0 : index
    %336 = vector.load %arg9[%c0_121, %c0_122] : memref<1x128xf32, #tpu.memory_space<vmem>>, vector<1x128xf32>
    %337 = vector.broadcast %336 : vector<1x128xf32> to vector<16x128xf32>
    %338 = arith.addf %335, %337 : vector<16x128xf32>
    %c0_123 = arith.constant 0 : index
    %c0_124 = arith.constant 0 : index
    %339 = vector.load %arg10[%c0_123, %c0_124] : memref<16x128xf32, #tpu.memory_space<vmem>>, vector<16x128xf32>
    tpu.vector_store %arg10[%c0_123, %c0_124], %338 {strides = array<i32>} : memref<16x128xf32, #tpu.memory_space<vmem>>, vector<16x128xf32>,
    return
  }
  func.func @transform_0(%arg0: i32) -> (i32, i32, i32) {
    %c0_i32 = arith.constant 0 : i32
    %c0_i32_0 = arith.constant 0 : i32
    %c0_i32_1 = arith.constant 0 : i32
    return %c0_i32, %arg0, %c0_i32_0 : i32, i32, i32
  }
  func.func @transform_1(%arg0: i32) -> (i32, i32) {
    %c0_i32 = arith.constant 0 : i32
    %c0_i32_0 = arith.constant 0 : i32
    %c0_i32_1 = arith.constant 0 : i32
    return %c0_i32, %c0_i32_0 : i32, i32
  }
  func.func @transform_2(%arg0: i32) -> (i32, i32) {
    %c0_i32 = arith.constant 0 : i32
    %c0_i32_0 = arith.constant 0 : i32
    %c0_i32_1 = arith.constant 0 : i32
    return %c0_i32, %c0_i32_0 : i32, i32
  }
  func.func @transform_3(%arg0: i32) -> (i32, i32) {
    %c0_i32 = arith.constant 0 : i32
    %c0_i32_0 = arith.constant 0 : i32
    %c0_i32_1 = arith.constant 0 : i32
    return %c0_i32, %c0_i32_0 : i32, i32
  }
  func.func @transform_4(%arg0: i32) -> (i32, i32) {
    %c0_i32 = arith.constant 0 : i32
    %c0_i32_0 = arith.constant 0 : i32
    %c0_i32_1 = arith.constant 0 : i32
    return %c0_i32, %c0_i32_0 : i32, i32
  }
  func.func @transform_5(%arg0: i32) -> (i32, i32) {
    %c0_i32 = arith.constant 0 : i32
    %c0_i32_0 = arith.constant 0 : i32
    %c0_i32_1 = arith.constant 0 : i32
    return %c0_i32, %c0_i32_0 : i32, i32
  }
  func.func @transform_6(%arg0: i32) -> (i32, i32) {
    %c0_i32 = arith.constant 0 : i32
    %c0_i32_0 = arith.constant 0 : i32
    %c0_i32_1 = arith.constant 0 : i32
    return %c0_i32, %c0_i32_0 : i32, i32
  }
  func.func @transform_7(%arg0: i32) -> (i32, i32) {
    %c0_i32 = arith.constant 0 : i32
    %c0_i32_0 = arith.constant 0 : i32
    %c0_i32_1 = arith.constant 0 : i32
    return %c0_i32, %c0_i32_0 : i32, i32
  }
  func.func @transform_8(%arg0: i32) -> (i32, i32) {
    %c0_i32 = arith.constant 0 : i32
    %c0_i32_0 = arith.constant 0 : i32
    %c0_i32_1 = arith.constant 0 : i32
    return %c0_i32, %c0_i32_0 : i32, i32
  }
  func.func @transform_9(%arg0: i32) -> (i32, i32) {
    %c0_i32 = arith.constant 0 : i32
    %c0_i32_0 = arith.constant 0 : i32
    return %arg0, %c0_i32 : i32, i32
  }
}

</mosaic_0001>

<bundles_post_ra>
// kernel: _bilstm_fc.1
= control target key start
LH: loop header
LB: loop body
LE: loop exit
PB: predicated region body
PF: predicated region fallthrough
CT: control target
= control target key end

     0   :  { %v3158_v1 = vmov 0   ;;  %vm3160_vm0 = vmmov 0   ;;  %s4255_s1 = inlined_call_operand.vmem [shape: bf16[128,512], index: 1, kind: input, shape index: {}]   ;;  %s4256_s0 = inlined_call_operand.vmem [shape: bf16[8,16,128], index: 0, kind: input, shape index: {}]   ;;  %s4257_s2 = inlined_call_operand.vmem [shape: bf16[128,512], index: 2, kind: input, shape index: {}]   ;;  %s4258_s3 = inlined_call_operand.vmem [shape: f32[1,512], index: 3, kind: input, shape index: {}]   ;;  %s4259_s4 = inlined_call_operand.vmem [shape: bf16[128,512], index: 4, kind: input, shape index: {}]   ;;  %s4260_s6 = inlined_call_operand.vmem [shape: bf16[128,128], index: 6, kind: input, shape index: {}]   ;;  %s4261_s7 = inlined_call_operand.vmem [shape: bf16[128,128], index: 7, kind: input, shape index: {}]   ;;  %s4262_s5 = inlined_call_operand.vmem [shape: f32[1,512], index: 5, kind: input, shape index: {}]   ;;  %s4263_s8 = inlined_call_operand.vmem [shape: f32[1,128], index: 8, kind: input, shape index: {}]   ;;  %s4264_s9 = inlined_call_operand.vmem [shape: f32[16,128], index: 9, kind: output, shape index: {}]  }
   0x1   :  { %v2777_v0 = vld [vmem:[%s4255_s1 + $0x4] ss:$16 sps:$4 sm:$0xff]   ;;  %375 = vmatprep.mubr.bf16.mxu0 %v3158_v1  ;;  %488 = vmatprep.mubr.bf16.mxu1 %v3158_v1  ;;  %v2779_v2 = vld [vmem:[%s4255_s1 + $0xc] ss:$16 sps:$4 sm:$0xff]   ;;  %v2781_v3 = vld [vmem:[%s4255_s1] ss:$16 sps:$4 sm:$0xff]  }
   0x2   :  { %343 = vmatprep.subr.bf16.mxu0 %v2777_v0  ;;  %v2782_v4 = vld [vmem:[%s4255_s1 + $0x8] ss:$16 sps:$4 sm:$0xff]   ;;  %456 = vmatprep.subr.bf16.mxu1 %v2779_v2  ;;  %v2783_v5 = vld [vmem:[%s4255_s1 + $0x24] ss:$16 sps:$4 sm:$0xff]   ;;  %v2785_v6 = vld [vmem:[%s4255_s1 + $0x2c] ss:$16 sps:$4 sm:$0xff]  }
   0x3   :  { %344 = vmatpush1.bf16.msra.mxu0 %v2781_v3  ;;  %457 = vmatpush1.bf16.msra.mxu1 %v2782_v4  ;;  %v2787_v7 = vld [vmem:[%s4255_s1 + $0x20] ss:$16 sps:$4 sm:$0xff]   ;;  %v2788_v8 = vld [vmem:[%s4255_s1 + $0x28] ss:$16 sps:$4 sm:$0xff]   ;;  %v2789_v9 = vld [vmem:[%s4255_s1 + $0x44] ss:$16 sps:$4 sm:$0xff]  }
   0x4   :  { %345 = vmatprep.subr.bf16.mxu0 %v2783_v5  ;;  %458 = vmatprep.subr.bf16.mxu1 %v2785_v6  ;;  %v2791_v10 = vld [vmem:[%s4255_s1 + $0x4c] ss:$16 sps:$4 sm:$0xff]   ;;  %v2793_v11 = vld [vmem:[%s4255_s1 + $0x40] ss:$16 sps:$4 sm:$0xff]   ;;  %v2794_v12 = vld [vmem:[%s4255_s1 + $0x48] ss:$16 sps:$4 sm:$0xff]  }
   0x5   :  { %v2795_v13 = vld [vmem:[%s4255_s1 + $0x64] ss:$16 sps:$4 sm:$0xff]   ;;  %v2797_v14 = vld [vmem:[%s4255_s1 + $0x6c] ss:$16 sps:$4 sm:$0xff]   ;;  %v2799_v15 = vld [vmem:[%s4255_s1 + $0x60] ss:$16 sps:$4 sm:$0xff]  }
   0x6   :  { %v2800_v16 = vld [vmem:[%s4255_s1 + $0x68] ss:$16 sps:$4 sm:$0xff]   ;;  %v2801_v17 = vld [vmem:[%s4255_s1 + $0x84] ss:$16 sps:$4 sm:$0xff]   ;;  %v2803_v18 = vld [vmem:[%s4255_s1 + $0x8c] ss:$16 sps:$4 sm:$0xff]  }
   0x7   :  { %346 = vmatpush1.bf16.msra.mxu0 %v2787_v7  ;;  %459 = vmatpush1.bf16.msra.mxu1 %v2788_v8  ;;  %v2805_v19 = vld [vmem:[%s4255_s1 + $0x80] ss:$16 sps:$4 sm:$0xff]   ;;  %v2806_v20 = vld [vmem:[%s4255_s1 + $0x88] ss:$16 sps:$4 sm:$0xff]   ;;  %v2807_v21 = vld [vmem:[%s4255_s1 + $0xa4] ss:$16 sps:$4 sm:$0xff]  }
   0x8   :  { %347 = vmatprep.subr.bf16.mxu0 %v2789_v9  ;;  %460 = vmatprep.subr.bf16.mxu1 %v2791_v10  ;;  %v2809_v22 = vld [vmem:[%s4255_s1 + $0xac] ss:$16 sps:$4 sm:$0xff]   ;;  %v2811_v23 = vld [vmem:[%s4255_s1 + $0xa0] ss:$16 sps:$4 sm:$0xff]   ;;  %v2812_v24 = vld [vmem:[%s4255_s1 + $0xa8] ss:$16 sps:$4 sm:$0xff]   ;;  %v115_v10 = vlaneseq }
   0x9   :  { %v2813_v25 = vld [vmem:[%s4255_s1 + $0xc4] ss:$16 sps:$4 sm:$0xff]   ;;  %v2815_v26 = vld [vmem:[%s4255_s1 + $0xcc] ss:$16 sps:$4 sm:$0xff]   ;;  %v2817_v27 = vld [vmem:[%s4255_s1 + $0xc0] ss:$16 sps:$4 sm:$0xff]  }
   0xa   :  { %v2818_v28 = vld [vmem:[%s4255_s1 + $0xc8] ss:$16 sps:$4 sm:$0xff]   ;;  %v2819_v29 = vld [vmem:[%s4255_s1 + $0xe4] ss:$16 sps:$4 sm:$0xff]   ;;  %v2821_v30 = vld [vmem:[%s4255_s1 + $0xec] ss:$16 sps:$4 sm:$0xff]  }
   0xb   :  { %348 = vmatpush1.bf16.msra.mxu0 %v2793_v11  ;;  %461 = vmatpush1.bf16.msra.mxu1 %v2794_v12  ;;  %v2823_v31 = vld [vmem:[%s4255_s1 + $0xe0] ss:$16 sps:$4 sm:$0xff]   ;;  %v2824_v32 = vld [vmem:[%s4255_s1 + $0xe8] ss:$16 sps:$4 sm:$0xff]   ;;  %v3312_v33 = vld [vmem:[%s4257_s2 + $0x4] ss:$16 sps:$4 sm:$0xff]  }
   0xc   :  { %349 = vmatprep.subr.bf16.mxu0 %v2795_v13  ;;  %462 = vmatprep.subr.bf16.mxu1 %v2797_v14  ;;  %v3317_v34 = vld [vmem:[%s4257_s2 + $0xc] ss:$16 sps:$4 sm:$0xff]   ;;  %v2825_v35 = vld [vmem:[%s4256_s0] sm:$0xff]   ;;  %v3337_v38 = vld [vmem:[%s4257_s2 + $0x8] ss:$16 sps:$4 sm:$0xff]   ;;  %v3579_v11 = vshrl.u32 %v115_v10, 7 }
   0xd   :  { %v3325_v36 = vld [vmem:[%s4257_s2] ss:$16 sps:$4 sm:$0xff]   ;;  %v3332_v37 = vld [vmem:[%s4257_s2 + $0x24] ss:$16 sps:$4 sm:$0xff]   ;;  %v3342_v39 = vld [vmem:[%s4257_s2 + $0x2c] ss:$16 sps:$4 sm:$0xff]  }
   0xe   :  { %v3349_v40 = vld [vmem:[%s4257_s2 + $0x20] ss:$16 sps:$4 sm:$0xff]   ;;  %v3356_v41 = vld [vmem:[%s4257_s2 + $0x44] ss:$16 sps:$4 sm:$0xff]   ;;  %v3362_v42 = vld [vmem:[%s4257_s2 + $0x28] ss:$16 sps:$4 sm:$0xff]  }
   0xf   :  { %350 = vmatpush1.bf16.msra.mxu0 %v2799_v15  ;;  %463 = vmatpush1.bf16.msra.mxu1 %v2800_v16  ;;  %v2831_v43 = vld [vmem:[%s4256_s0 + $0x8] sm:$0xff]   ;;  %v3373_v44 = vld [vmem:[%s4257_s2 + $0x40] ss:$16 sps:$4 sm:$0xff]   ;;  %v3383_v46 = vld [vmem:[%s4257_s2 + $0x64] ss:$16 sps:$4 sm:$0xff]   ;;  %v117_v12 = vsub.s32 0, %v3579_v11 }
  0x10   :  { %351 = vmatprep.subr.bf16.mxu0 %v2801_v17  ;;  %464 = vmatprep.subr.bf16.mxu1 %v2803_v18  ;;  %v3378_v45 = vld [vmem:[%s4257_s2 + $0x4c] ss:$16 sps:$4 sm:$0xff]   ;;  %v3389_v47 = vld [vmem:[%s4257_s2 + $0x48] ss:$16 sps:$4 sm:$0xff]   ;;  %v3403_v49 = vld [vmem:[%s4257_s2 + $0x60] ss:$16 sps:$4 sm:$0xff]  }
  0x11   :  { %v3394_v48 = vld [vmem:[%s4257_s2 + $0x6c] ss:$16 sps:$4 sm:$0xff]   ;;  %v3408_v50 = vld [vmem:[%s4257_s2 + $0x84] ss:$16 sps:$4 sm:$0xff]   ;;  %v3415_v51 = vld [vmem:[%s4257_s2 + $0x68] ss:$16 sps:$4 sm:$0xff]  }
  0x12   :  { %v2838_v52 = vld [vmem:[%s4256_s0 + $0x10] sm:$0xff]   ;;  %v3430_v54 = vld [vmem:[%s4257_s2 + $0x8c] ss:$16 sps:$4 sm:$0xff]   ;;  %v3442_v56 = vld [vmem:[%s4257_s2 + $0x88] ss:$16 sps:$4 sm:$0xff]   ;;  %v121_v14 = vsub.s32 1, %v3579_v11 }
  0x13   :  { %352 = vmatpush1.bf16.msra.mxu0 %v2805_v19  ;;  %465 = vmatpush1.bf16.msra.mxu1 %v2806_v20  ;;  %v3424_v53 = vld [vmem:[%s4257_s2 + $0x80] ss:$16 sps:$4 sm:$0xff]   ;;  %v3437_v55 = vld [vmem:[%s4257_s2 + $0xa4] ss:$16 sps:$4 sm:$0xff]   ;;  %v3447_v57 = vld [vmem:[%s4257_s2 + $0xac] ss:$16 sps:$4 sm:$0xff]  }
  0x14   :  { %353 = vmatprep.subr.bf16.mxu0 %v2807_v21  ;;  %466 = vmatprep.subr.bf16.mxu1 %v2809_v22  ;;  %v3456_v58 = vld [vmem:[%s4257_s2 + $0xa0] ss:$16 sps:$4 sm:$0xff]   ;;  %v3463_v59 = vld [vmem:[%s4257_s2 + $0xc4] ss:$16 sps:$4 sm:$0xff]   ;;  %v3468_v60 = vld [vmem:[%s4257_s2 + $0xa8] ss:$16 sps:$4 sm:$0xff]  }
  0x15   :  { %v2845_v61 = vld [vmem:[%s4256_s0 + $0x18] sm:$0xff]   ;;  %v3478_v62 = vld [vmem:[%s4257_s2 + $0xc0] ss:$16 sps:$4 sm:$0xff]   ;;  %v3490_v0 = vld [vmem:[%s4257_s2 + $0xe4] ss:$16 sps:$4 sm:$0xff]   ;;  %v125_v16 = vsub.s32 2, %v3579_v11 }
  0x16   :  { %v3483_v63 = vld [vmem:[%s4257_s2 + $0xcc] ss:$16 sps:$4 sm:$0xff]   ;;  %v3495_v2 = vld [vmem:[%s4257_s2 + $0xc8] ss:$16 sps:$4 sm:$0xff]   ;;  %v3509_v4 = vld [vmem:[%s4257_s2 + $0xe0] ss:$16 sps:$4 sm:$0xff]  }
  0x17   :  { %354 = vmatpush1.bf16.msra.mxu0 %v2811_v23  ;;  %467 = vmatpush1.bf16.msra.mxu1 %v2812_v24  ;;  %v3500_v3 = vld [vmem:[%s4257_s2 + $0xec] ss:$16 sps:$4 sm:$0xff]   ;;  %v3516_v5 = vld [vmem:[%s4257_s2 + $0xe8] ss:$16 sps:$4 sm:$0xff]   ;;  %v2852_v6 = vld [vmem:[%s4256_s0 + $0x20] sm:$0xff]  }
  0x18   :  { %355 = vmatprep.subr.bf16.mxu0 %v2813_v25  ;;  %468 = vmatprep.subr.bf16.mxu1 %v2815_v26  ;;  %v2859_v7 = vld [vmem:[%s4256_s0 + $0x28] sm:$0xff]   ;;  %v2866_v8 = vld [vmem:[%s4256_s0 + $0x30] sm:$0xff]   ;;  %v2873_v9 = vld [vmem:[%s4256_s0 + $0x38] sm:$0xff]  }
  0x19   :  { %v113_v13 = vld [vmem:[%s4258_s3] sm:$0xf] }
  0x1a   :  { %v3588_v15 = vrot.slane %v113_v13, %v117_v12  ;;  %v3593_v17 = vrot.slane %v113_v13, %v121_v14  ;;  %v3598_v21 = vrot.slane %v113_v13, %v125_v16 }
  0x1b   :  { %356 = vmatpush1.bf16.msra.mxu0 %v2817_v27  ;;  %469 = vmatpush1.bf16.msra.mxu1 %v2818_v28 }
  0x1c   :  { %357 = vmatprep.subr.bf16.mxu0 %v2819_v29  ;;  %470 = vmatprep.subr.bf16.mxu1 %v2821_v30 }
  0x1f   :  { %358 = vmatpush1.bf16.msra.mxu0 %v2823_v31  ;;  %471 = vmatpush1.bf16.msra.mxu1 %v2824_v32  ;;  %v129_v32 = vsub.s32 3, %v3579_v11 }
  0x20   :  { %801 = vmatprep.subr.bf16.mxu0 %v3312_v33  ;;  %844 = vmatprep.subr.bf16.mxu1 %v3317_v34 }
  0x22   :  { %376 = vmatmul.mubr.bf16.vlgmr.msra.gmra.mrb[0].mxu0 %v2825_v35  ;;  %489 = vmatmul.mubr.bf16.vlgmr.msra.gmra.mrb[0].mxu1 %v2825_v35 }
  0x23   :  { %802 = vmatpush1.bf16.msra.mxu0 %v3325_v36  ;;  %385 = vmatprep.mubr.bf16.mxu0 %v3158_v1 }
  0x24   :  { %498 = vmatprep.mubr.bf16.mxu1 %v3158_v1  ;;  %803 = vmatprep.subr.bf16.mxu0 %v3332_v37 }
  0x25   :  { %845 = vmatpush1.bf16.msra.mxu1 %v3337_v38 }
  0x26   :  { %846 = vmatprep.subr.bf16.mxu1 %v3342_v39 }
  0x27   :  { %804 = vmatpush1.bf16.msra.mxu0 %v3349_v40 }
  0x28   :  { %805 = vmatprep.subr.bf16.mxu0 %v3356_v41 }
  0x29   :  { %847 = vmatpush1.bf16.msra.mxu1 %v3362_v42 }
  0x2a   :  { %386 = vmatmul.mubr.bf16.gmra.mrb[4].mxu0 %v2831_v43  ;;  %499 = vmatmul.mubr.bf16.gmra.mrb[4].mxu1 %v2831_v43 }
  0x2b   :  { %395 = vmatprep.mubr.bf16.mxu0 %v3158_v1  ;;  %508 = vmatprep.mubr.bf16.mxu1 %v3158_v1 }
  0x2c   :  { %806 = vmatpush1.bf16.msra.mxu0 %v3373_v44  ;;  %848 = vmatprep.subr.bf16.mxu1 %v3378_v45 }
  0x2d   :  { %807 = vmatprep.subr.bf16.mxu0 %v3383_v46  ;;  %849 = vmatpush1.bf16.msra.mxu1 %v3389_v47 }
  0x2e   :  { %850 = vmatprep.subr.bf16.mxu1 %v3394_v48 }
  0x30   :  { %808 = vmatpush1.bf16.msra.mxu0 %v3403_v49 }
  0x31   :  { %809 = vmatprep.subr.bf16.mxu0 %v3408_v50  ;;  %851 = vmatpush1.bf16.msra.mxu1 %v3415_v51 }
  0x32   :  { %396 = vmatmul.mubr.bf16.gmra.mrb[8].mxu0 %v2838_v52  ;;  %509 = vmatmul.mubr.bf16.gmra.mrb[8].mxu1 %v2838_v52 }
  0x33   :  { %405 = vmatprep.mubr.bf16.mxu0 %v3158_v1  ;;  %518 = vmatprep.mubr.bf16.mxu1 %v3158_v1 }
  0x34   :  { %810 = vmatpush1.bf16.msra.mxu0 %v3424_v53  ;;  %852 = vmatprep.subr.bf16.mxu1 %v3430_v54 }
  0x35   :  { %811 = vmatprep.subr.bf16.mxu0 %v3437_v55  ;;  %853 = vmatpush1.bf16.msra.mxu1 %v3442_v56 }
  0x36   :  { %854 = vmatprep.subr.bf16.mxu1 %v3447_v57 }
  0x38   :  { %812 = vmatpush1.bf16.msra.mxu0 %v3456_v58 }
  0x39   :  { %813 = vmatprep.subr.bf16.mxu0 %v3463_v59  ;;  %855 = vmatpush1.bf16.msra.mxu1 %v3468_v60 }
  0x3a   :  { %406 = vmatmul.mubr.bf16.gmra.mrb[12].mxu0 %v2845_v61  ;;  %519 = vmatmul.mubr.bf16.gmra.mrb[12].mxu1 %v2845_v61 }
  0x3b   :  { %415 = vmatprep.mubr.bf16.mxu0 %v3158_v1  ;;  %528 = vmatprep.mubr.bf16.mxu1 %v3158_v1 }
  0x3c   :  { %814 = vmatpush1.bf16.msra.mxu0 %v3478_v62  ;;  %856 = vmatprep.subr.bf16.mxu1 %v3483_v63 }
  0x3d   :  { %815 = vmatprep.subr.bf16.mxu0 %v3490_v0  ;;  %857 = vmatpush1.bf16.msra.mxu1 %v3495_v2 }
  0x3e   :  { %858 = vmatprep.subr.bf16.mxu1 %v3500_v3 }
  0x40   :  { %816 = vmatpush1.bf16.msra.mxu0 %v3509_v4 }
  0x41   :  { %859 = vmatpush1.bf16.msra.mxu1 %v3516_v5  ;;  %940 = vmatprep.subr.bf16.mxu0 %v3312_v33 }
  0x42   :  { %416 = vmatmul.mubr.bf16.gmra.mrb[16].mxu0 %v2852_v6  ;;  %529 = vmatmul.mubr.bf16.gmra.mrb[16].mxu1 %v2852_v6  ;;  %v3607_v6 = vrot.slane %v113_v13, %v129_v32 }
  0x43   :  { %425 = vmatprep.mubr.bf16.mxu0 %v3158_v1  ;;  %538 = vmatprep.mubr.bf16.mxu1 %v3158_v1 }
  0x44   :  { %983 = vmatprep.subr.bf16.mxu1 %v3317_v34 }
  0x4a   :  { %426 = vmatmul.mubr.bf16.gmra.mrb[20].mxu0 %v2859_v7  ;;  %539 = vmatmul.mubr.bf16.gmra.mrb[20].mxu1 %v2859_v7 }
  0x4b   :  { %435 = vmatprep.mubr.bf16.mxu0 %v3158_v1  ;;  %548 = vmatprep.mubr.bf16.mxu1 %v3158_v1 }
  0x52   :  { %436 = vmatmul.mubr.bf16.gmra.mrb[24].mxu0 %v2866_v8  ;;  %549 = vmatmul.mubr.bf16.gmra.mrb[24].mxu1 %v2866_v8 }
  0x53   :  { %445 = vmatprep.mubr.bf16.mxu0 %v3158_v1  ;;  %558 = vmatprep.mubr.bf16.mxu1 %v3158_v1 }
  0x5a   :  { %446 = vmatmul.mubr.bf16.gmra.mrb[28].mxu0 %v2873_v9  ;;  %559 = vmatmul.mubr.bf16.gmra.mrb[28].mxu1 %v2873_v9 }
  0x5b   :  { %833 = vmatprep.mubr.bf16.mxu0 %v3158_v1  ;;  %876 = vmatprep.mubr.bf16.mxu1 %v3158_v1 }
  0x62   :  { %834 = vmatmul.mubr.bf16.vlgmr.msra.gmra.mrb[0].mxu0 %v3158_v1  ;;  %877 = vmatmul.mubr.bf16.vlgmr.msra.gmra.mrb[0].mxu1 %v3158_v1 }
  0x63   :  { %941 = vmatpush1.bf16.msra.mxu0 %v3325_v36  ;;  %984 = vmatpush1.bf16.msra.mxu1 %v3337_v38 }
  0x64   :  { %942 = vmatprep.subr.bf16.mxu0 %v3332_v37  ;;  %985 = vmatprep.subr.bf16.mxu1 %v3342_v39 }
  0x65   :  { %972 = vmatprep.mubr.bf16.mxu0 %v3158_v1  ;;  %1015 = vmatprep.mubr.bf16.mxu1 %v3158_v1 }
  0x67   :  { %943 = vmatpush1.bf16.msra.mxu0 %v3349_v40  ;;  %986 = vmatpush1.bf16.msra.mxu1 %v3362_v42 }
  0x68   :  { %944 = vmatprep.subr.bf16.mxu0 %v3356_v41  ;;  %987 = vmatprep.subr.bf16.mxu1 %v3378_v45 }
  0x6b   :  { %945 = vmatpush1.bf16.msra.mxu0 %v3373_v44  ;;  %988 = vmatpush1.bf16.msra.mxu1 %v3389_v47 }
  0x6c   :  { %946 = vmatprep.subr.bf16.mxu0 %v3383_v46  ;;  %989 = vmatprep.subr.bf16.mxu1 %v3394_v48 }
  0x6f   :  { %947 = vmatpush1.bf16.msra.mxu0 %v3403_v49  ;;  %990 = vmatpush1.bf16.msra.mxu1 %v3415_v51 }
  0x70   :  { %948 = vmatprep.subr.bf16.mxu0 %v3408_v50  ;;  %991 = vmatprep.subr.bf16.mxu1 %v3430_v54 }
  0x73   :  { %949 = vmatpush1.bf16.msra.mxu0 %v3424_v53  ;;  %992 = vmatpush1.bf16.msra.mxu1 %v3442_v56 }
  0x74   :  { %950 = vmatprep.subr.bf16.mxu0 %v3437_v55  ;;  %993 = vmatprep.subr.bf16.mxu1 %v3447_v57 }
  0x77   :  { %951 = vmatpush1.bf16.msra.mxu0 %v3456_v58  ;;  %994 = vmatpush1.bf16.msra.mxu1 %v3468_v60 }
  0x78   :  { %952 = vmatprep.subr.bf16.mxu0 %v3463_v59  ;;  %995 = vmatprep.subr.bf16.mxu1 %v3483_v63 }
  0x7b   :  { %953 = vmatpush1.bf16.msra.mxu0 %v3478_v62  ;;  %996 = vmatpush1.bf16.msra.mxu1 %v3495_v2 }
  0x7c   :  { %954 = vmatprep.subr.bf16.mxu0 %v3490_v0  ;;  %997 = vmatprep.subr.bf16.mxu1 %v3500_v3 }
  0x7f   :  { %955 = vmatpush1.bf16.msra.mxu0 %v3509_v4  ;;  %998 = vmatpush1.bf16.msra.mxu1 %v3516_v5 }
  0x80   :  { %1079 = vmatprep.subr.bf16.mxu0 %v3312_v33  ;;  %1122 = vmatprep.subr.bf16.mxu1 %v3317_v34 }
 0x135   :  { %v835_v18 = vpop.f32.mrb[0].mxu0  ;;  %v878_v19 = vpop.f32.mrb[0].mxu1 }
 0x136   :  { %v2646_v20 = vadd.f32 %v835_v18, %v3588_v15  ;;  %v837_v22 = vpop.f32.mrb[1].mxu0  ;;  %v880_v23 = vpop.f32.mrb[1].mxu1  ;;  %v2678_v43 = vadd.f32 %v878_v19, %v3598_v21 }
 0x137   :  { %v2647_v24 = vadd.f32 %v837_v22, %v3593_v17  ;;  %v839_v25 = vpop.f32.mrb[2].mxu0  ;;  %v882_v26 = vpop.f32.mrb[2].mxu1  ;;  %v2679_v8 = vadd.f32 %v880_v23, %v3607_v6 }
 0x138   :  { %v895_v27 = vmul.f32 0.5, %v2646_v20  ;;  %v2648_v28 = vadd.f32 %v839_v25, %v3588_v15  ;;  %v841_v29 = vpop.f32.mrb[3].mxu0  ;;  %v884_v30 = vpop.f32.mrb[3].mxu1  ;;  %v2680_v7 = vadd.f32 %v882_v26, %v3598_v21 }
 0x139   :  { %v903_v31 = vmul.f32 0.5, %v2647_v24  ;;  %v2649_v35 = vadd.f32 %v841_v29, %v3593_v17  ;;  %v2681_v9 = vadd.f32 %v884_v30, %v3607_v6  ;;  %v913_v20 = vmul.f32 0.5, %v2679_v8 }
 0x13a   :  { %2945 = vtanh.f32 %v895_v27  ;;  %v896_v52 = vmul.f32 0.5, %v2648_v28 }
 0x13b   :  { %2947 = vtanh.f32 %v903_v31  ;;  %v904_v61 = vmul.f32 0.5, %v2649_v35  ;;  %v914_v24 = vmul.f32 0.5, %v2681_v9 }
 0x13c   :  { %2949 = vtanh.f32 %v896_v52 }
 0x13d   :  { %2951 = vtanh.f32 %v2678_v43 }
 0x13e   :  { %2953 = vtanh.f32 %v904_v61 }
 0x13f   :  { %2955 = vtanh.f32 %v2680_v7 }
 0x140   :  { %2957 = vtanh.f32 %v913_v20 }
 0x141   :  { %2959 = vtanh.f32 %v914_v24 }
 0x144   :  { %v2946_v10 = vpop.eup %2945 }
 0x145   :  { %v2948_v18 = vpop.eup %2947  ;;  %v899_v19 = vmul.f32 0.5, %v2946_v10 }
 0x146   :  { %v907_v22 = vmul.f32 0.5, %v2948_v18  ;;  %v2950_v25 = vpop.eup %2949 }
 0x147   :  { %v901_v27 = vadd.f32 0.5, %v899_v19  ;;  %v2952_v13 = vpop.eup %2951  ;;  %v900_v29 = vmul.f32 0.5, %v2950_v25 }
 0x148   :  { %v909_v28 = vadd.f32 0.5, %v907_v22  ;;  %v2954_v31 = vpop.eup %2953 }
 0x149   :  { %v923_v26 = vmul.f32 %v2952_v13, %v901_v27  ;;  %v902_v43 = vadd.f32 0.5, %v900_v29  ;;  %v908_v23 = vmul.f32 0.5, %v2954_v31  ;;  %v2956_v52 = vpop.eup %2955 }
 0x14a   :  { %v921_v35 = vmul.f32 0.0, %v909_v28  ;;  %v2958_v10 = vpop.eup %2957 }
 0x14b   :  { %v910_v61 = vadd.f32 0.5, %v908_v23  ;;  %v924_v7 = vmul.f32 %v2956_v52, %v902_v43  ;;  %v2960_v18 = vpop.eup %2959  ;;  %v917_v19 = vmul.f32 0.5, %v2958_v10 }
 0x14c   :  { %v3612_v30 = vadd.f32 %v923_v26, %v921_v35  ;;  %v918_v20 = vmul.f32 0.5, %v2960_v18 }
 0x14d   :  { %v922_v8 = vmul.f32 0.0, %v910_v61  ;;  %v919_v25 = vadd.f32 0.5, %v917_v19 }
 0x14e   :  { %2961 = vtanh.f32 %v3612_v30  ;;  %v920_v27 = vadd.f32 0.5, %v918_v20 }
 0x14f   :  { %v3615_v9 = vadd.f32 %v924_v7, %v922_v8 }
 0x151   :  { %2963 = vtanh.f32 %v3615_v9 }
 0x158   :  { %v2962_v22 = vpop.eup %2961 }
 0x159   :  { %v929_v13 = vmul.f32 %v2962_v22, %v919_v25 }
 0x15b   :  { %v2964_v24 = vpop.eup %2963 }
 0x15c   :  { %v930_v28 = vmul.f32 %v2964_v24, %v920_v27 }
 0x15e   :  { %v939_v29 = vpack.c.bf16 %v930_v28, %v929_v13 }
 0x160   :  { %973 = vmatmul.mubr.bf16.vlgmr.msra.gmra.mrb[4].mxu0 %v939_v29  ;;  %1016 = vmatmul.mubr.bf16.vlgmr.msra.gmra.mrb[4].mxu1 %v939_v29 }
 0x161   :  { %1080 = vmatpush1.bf16.msra.mxu0 %v3325_v36  ;;  %1123 = vmatpush1.bf16.msra.mxu1 %v3337_v38 }
 0x162   :  { %1081 = vmatprep.subr.bf16.mxu0 %v3332_v37  ;;  %1124 = vmatprep.subr.bf16.mxu1 %v3342_v39 }
 0x163   :  { %1111 = vmatprep.mubr.bf16.mxu0 %v3158_v1  ;;  %1154 = vmatprep.mubr.bf16.mxu1 %v3158_v1 }
 0x165   :  { %1082 = vmatpush1.bf16.msra.mxu0 %v3349_v40  ;;  %1125 = vmatpush1.bf16.msra.mxu1 %v3362_v42 }
 0x166   :  { %1083 = vmatprep.subr.bf16.mxu0 %v3356_v41  ;;  %1126 = vmatprep.subr.bf16.mxu1 %v3378_v45 }
 0x169   :  { %1084 = vmatpush1.bf16.msra.mxu0 %v3373_v44  ;;  %1127 = vmatpush1.bf16.msra.mxu1 %v3389_v47 }
 0x16a   :  { %1085 = vmatprep.subr.bf16.mxu0 %v3383_v46  ;;  %1128 = vmatprep.subr.bf16.mxu1 %v3394_v48 }
 0x16d   :  { %1086 = vmatpush1.bf16.msra.mxu0 %v3403_v49  ;;  %1129 = vmatpush1.bf16.msra.mxu1 %v3415_v51 }
 0x16e   :  { %1087 = vmatprep.subr.bf16.mxu0 %v3408_v50  ;;  %1130 = vmatprep.subr.bf16.mxu1 %v3430_v54 }
 0x171   :  { %1088 = vmatpush1.bf16.msra.mxu0 %v3424_v53  ;;  %1131 = vmatpush1.bf16.msra.mxu1 %v3442_v56 }
 0x172   :  { %1089 = vmatprep.subr.bf16.mxu0 %v3437_v55  ;;  %1132 = vmatprep.subr.bf16.mxu1 %v3447_v57 }
 0x175   :  { %1090 = vmatpush1.bf16.msra.mxu0 %v3456_v58  ;;  %1133 = vmatpush1.bf16.msra.mxu1 %v3468_v60 }
 0x176   :  { %1091 = vmatprep.subr.bf16.mxu0 %v3463_v59  ;;  %1134 = vmatprep.subr.bf16.mxu1 %v3483_v63 }
 0x179   :  { %1092 = vmatpush1.bf16.msra.mxu0 %v3478_v62  ;;  %1135 = vmatpush1.bf16.msra.mxu1 %v3495_v2 }
 0x17a   :  { %1093 = vmatprep.subr.bf16.mxu0 %v3490_v0  ;;  %1136 = vmatprep.subr.bf16.mxu1 %v3500_v3 }
 0x17d   :  { %1094 = vmatpush1.bf16.msra.mxu0 %v3509_v4  ;;  %1137 = vmatpush1.bf16.msra.mxu1 %v3516_v5 }
 0x17e   :  { %1218 = vmatprep.subr.bf16.mxu0 %v3312_v33  ;;  %1261 = vmatprep.subr.bf16.mxu1 %v3317_v34 }
 0x233   :  { %v974_v31 = vpop.f32.mrb[4].mxu0  ;;  %v1017_v26 = vpop.f32.mrb[4].mxu1 }
 0x234   :  { %v2650_v35 = vadd.f32 %v974_v31, %v3588_v15  ;;  %v976_v43 = vpop.f32.mrb[5].mxu0  ;;  %v1019_v23 = vpop.f32.mrb[5].mxu1  ;;  %v2682_v25 = vadd.f32 %v1017_v26, %v3598_v21 }
 0x235   :  { %v2651_v52 = vadd.f32 %v976_v43, %v3593_v17  ;;  %v978_v61 = vpop.f32.mrb[6].mxu0  ;;  %v1021_v7 = vpop.f32.mrb[6].mxu1  ;;  %v2683_v28 = vadd.f32 %v1019_v23, %v3607_v6 }
 0x236   :  { %v1034_v8 = vmul.f32 0.5, %v2650_v35  ;;  %v2652_v10 = vadd.f32 %v978_v61, %v3588_v15  ;;  %v980_v18 = vpop.f32.mrb[7].mxu0  ;;  %v1023_v19 = vpop.f32.mrb[7].mxu1  ;;  %v2684_v13 = vadd.f32 %v1021_v7, %v3598_v21 }
 0x237   :  { %v1042_v20 = vmul.f32 0.5, %v2651_v52  ;;  %v2653_v22 = vadd.f32 %v980_v18, %v3593_v17  ;;  %v2685_v29 = vadd.f32 %v1023_v19, %v3607_v6  ;;  %v1052_v52 = vmul.f32 0.5, %v2683_v28 }
 0x238   :  { %2965 = vtanh.f32 %v1034_v8  ;;  %v1035_v27 = vmul.f32 0.5, %v2652_v10 }
 0x239   :  { %2967 = vtanh.f32 %v1042_v20  ;;  %v1043_v24 = vmul.f32 0.5, %v2653_v22  ;;  %v1053_v8 = vmul.f32 0.5, %v2685_v29 }
 0x23a   :  { %2969 = vtanh.f32 %v1035_v27 }
 0x23b   :  { %2971 = vtanh.f32 %v2682_v25 }
 0x23c   :  { %2973 = vtanh.f32 %v1043_v24 }
 0x23d   :  { %2975 = vtanh.f32 %v2684_v13 }
 0x23e   :  { %2977 = vtanh.f32 %v1052_v52 }
 0x23f   :  { %2979 = vtanh.f32 %v1053_v8 }
 0x242   :  { %v2966_v31 = vpop.eup %2965 }
 0x243   :  { %v2968_v35 = vpop.eup %2967  ;;  %v1038_v43 = vmul.f32 0.5, %v2966_v31 }
 0x244   :  { %v1046_v61 = vmul.f32 0.5, %v2968_v35  ;;  %v2970_v26 = vpop.eup %2969 }
 0x245   :  { %v1040_v10 = vadd.f32 0.5, %v1038_v43  ;;  %v2972_v18 = vpop.eup %2971  ;;  %v1039_v22 = vmul.f32 0.5, %v2970_v26 }
 0x246   :  { %v1048_v20 = vadd.f32 0.5, %v1046_v61  ;;  %v2974_v27 = vpop.eup %2973 }
 0x247   :  { %v1062_v7 = vmul.f32 %v2972_v18, %v1040_v10  ;;  %v1041_v23 = vadd.f32 0.5, %v1039_v22  ;;  %v1047_v24 = vmul.f32 0.5, %v2974_v27  ;;  %v2976_v19 = vpop.eup %2975 }
 0x248   :  { %v1060_v25 = vmul.f32 %v1048_v20, %v3612_v30  ;;  %v2978_v43 = vpop.eup %2977 }
 0x249   :  { %v1049_v31 = vadd.f32 0.5, %v1047_v24  ;;  %v1063_v28 = vmul.f32 %v2976_v19, %v1041_v23  ;;  %v2980_v52 = vpop.eup %2979  ;;  %v1056_v61 = vmul.f32 0.5, %v2978_v43 }
 0x24a   :  { %v3661_v13 = vadd.f32 %v1062_v7, %v1060_v25  ;;  %v1057_v30 = vmul.f32 0.5, %v2980_v52 }
 0x24b   :  { %v1061_v29 = vmul.f32 %v1049_v31, %v3615_v9  ;;  %v1058_v10 = vadd.f32 0.5, %v1056_v61 }
 0x24c   :  { %2981 = vtanh.f32 %v3661_v13  ;;  %v1059_v8 = vadd.f32 0.5, %v1057_v30 }
 0x24d   :  { %v3665_v35 = vadd.f32 %v1063_v28, %v1061_v29 }
 0x24f   :  { %2983 = vtanh.f32 %v3665_v35 }
 0x256   :  { %v2982_v26 = vpop.eup %2981 }
 0x257   :  { %v1068_v20 = vmul.f32 %v2982_v26, %v1058_v10 }
 0x259   :  { %v2984_v18 = vpop.eup %2983 }
 0x25a   :  { %v1069_v22 = vmul.f32 %v2984_v18, %v1059_v8 }
 0x25c   :  { %v1078_v27 = vpack.c.bf16 %v1069_v22, %v1068_v20 }
 0x25e   :  { %1112 = vmatmul.mubr.bf16.vlgmr.msra.gmra.mrb[8].mxu0 %v1078_v27  ;;  %1155 = vmatmul.mubr.bf16.vlgmr.msra.gmra.mrb[8].mxu1 %v1078_v27 }
 0x25f   :  { %1219 = vmatpush1.bf16.msra.mxu0 %v3325_v36  ;;  %1262 = vmatpush1.bf16.msra.mxu1 %v3337_v38 }
 0x260   :  { %1220 = vmatprep.subr.bf16.mxu0 %v3332_v37  ;;  %1263 = vmatprep.subr.bf16.mxu1 %v3342_v39 }
 0x261   :  { %1250 = vmatprep.mubr.bf16.mxu0 %v3158_v1  ;;  %1293 = vmatprep.mubr.bf16.mxu1 %v3158_v1 }
 0x263   :  { %1221 = vmatpush1.bf16.msra.mxu0 %v3349_v40  ;;  %1264 = vmatpush1.bf16.msra.mxu1 %v3362_v42 }
 0x264   :  { %1222 = vmatprep.subr.bf16.mxu0 %v3356_v41  ;;  %1265 = vmatprep.subr.bf16.mxu1 %v3378_v45 }
 0x267   :  { %1223 = vmatpush1.bf16.msra.mxu0 %v3373_v44  ;;  %1266 = vmatpush1.bf16.msra.mxu1 %v3389_v47 }
 0x268   :  { %1224 = vmatprep.subr.bf16.mxu0 %v3383_v46  ;;  %1267 = vmatprep.subr.bf16.mxu1 %v3394_v48 }
 0x26b   :  { %1225 = vmatpush1.bf16.msra.mxu0 %v3403_v49  ;;  %1268 = vmatpush1.bf16.msra.mxu1 %v3415_v51 }
 0x26c   :  { %1226 = vmatprep.subr.bf16.mxu0 %v3408_v50  ;;  %1269 = vmatprep.subr.bf16.mxu1 %v3430_v54 }
 0x26f   :  { %1227 = vmatpush1.bf16.msra.mxu0 %v3424_v53  ;;  %1270 = vmatpush1.bf16.msra.mxu1 %v3442_v56 }
 0x270   :  { %1228 = vmatprep.subr.bf16.mxu0 %v3437_v55  ;;  %1271 = vmatprep.subr.bf16.mxu1 %v3447_v57 }
 0x273   :  { %1229 = vmatpush1.bf16.msra.mxu0 %v3456_v58  ;;  %1272 = vmatpush1.bf16.msra.mxu1 %v3468_v60 }
 0x274   :  { %1230 = vmatprep.subr.bf16.mxu0 %v3463_v59  ;;  %1273 = vmatprep.subr.bf16.mxu1 %v3483_v63 }
 0x277   :  { %1231 = vmatpush1.bf16.msra.mxu0 %v3478_v62  ;;  %1274 = vmatpush1.bf16.msra.mxu1 %v3495_v2 }
 0x278   :  { %1232 = vmatprep.subr.bf16.mxu0 %v3490_v0  ;;  %1275 = vmatprep.subr.bf16.mxu1 %v3500_v3 }
 0x27b   :  { %1233 = vmatpush1.bf16.msra.mxu0 %v3509_v4  ;;  %1276 = vmatpush1.bf16.msra.mxu1 %v3516_v5 }
 0x27c   :  { %1357 = vmatprep.subr.bf16.mxu0 %v3312_v33  ;;  %1400 = vmatprep.subr.bf16.mxu1 %v3317_v34 }
 0x331   :  { %v1113_v9 = vpop.f32.mrb[8].mxu0  ;;  %v1156_v7 = vpop.f32.mrb[8].mxu1 }
 0x332   :  { %v2654_v25 = vadd.f32 %v1113_v9, %v3588_v15  ;;  %v1115_v23 = vpop.f32.mrb[9].mxu0  ;;  %v1158_v24 = vpop.f32.mrb[9].mxu1  ;;  %v2686_v10 = vadd.f32 %v1156_v7, %v3598_v21 }
 0x333   :  { %v2655_v19 = vadd.f32 %v1115_v23, %v3593_v17  ;;  %v1117_v31 = vpop.f32.mrb[10].mxu0  ;;  %v1160_v28 = vpop.f32.mrb[10].mxu1  ;;  %v2687_v22 = vadd.f32 %v1158_v24, %v3607_v6 }
 0x334   :  { %v1173_v29 = vmul.f32 0.5, %v2654_v25  ;;  %v2656_v43 = vadd.f32 %v1117_v31, %v3588_v15  ;;  %v1119_v52 = vpop.f32.mrb[11].mxu0  ;;  %v1162_v61 = vpop.f32.mrb[11].mxu1  ;;  %v2688_v20 = vadd.f32 %v1160_v28, %v3598_v21 }
 0x335   :  { %v1181_v30 = vmul.f32 0.5, %v2655_v19  ;;  %v2657_v26 = vadd.f32 %v1119_v52, %v3593_v17  ;;  %v2689_v27 = vadd.f32 %v1162_v61, %v3607_v6  ;;  %v1191_v19 = vmul.f32 0.5, %v2687_v22 }
 0x336   :  { %2985 = vtanh.f32 %v1173_v29  ;;  %v1174_v8 = vmul.f32 0.5, %v2656_v43 }
 0x337   :  { %2987 = vtanh.f32 %v1181_v30  ;;  %v1182_v18 = vmul.f32 0.5, %v2657_v26  ;;  %v1192_v29 = vmul.f32 0.5, %v2689_v27 }
 0x338   :  { %2989 = vtanh.f32 %v1174_v8 }
 0x339   :  { %2991 = vtanh.f32 %v2686_v10 }
 0x33a   :  { %2993 = vtanh.f32 %v1182_v18 }
 0x33b   :  { %2995 = vtanh.f32 %v2688_v20 }
 0x33c   :  { %2997 = vtanh.f32 %v1191_v19 }
 0x33d   :  { %2999 = vtanh.f32 %v1192_v29 }
 0x340   :  { %v2986_v9 = vpop.eup %2985 }
 0x341   :  { %v2988_v25 = vpop.eup %2987  ;;  %v1177_v23 = vmul.f32 0.5, %v2986_v9 }
 0x342   :  { %v1185_v31 = vmul.f32 0.5, %v2988_v25  ;;  %v2990_v7 = vpop.eup %2989 }
 0x343   :  { %v1179_v43 = vadd.f32 0.5, %v1177_v23  ;;  %v2992_v52 = vpop.eup %2991  ;;  %v1178_v26 = vmul.f32 0.5, %v2990_v7 }
 0x344   :  { %v1187_v30 = vadd.f32 0.5, %v1185_v31  ;;  %v2994_v8 = vpop.eup %2993 }
 0x345   :  { %v1201_v28 = vmul.f32 %v2992_v52, %v1179_v43  ;;  %v1180_v24 = vadd.f32 0.5, %v1178_v26  ;;  %v1186_v18 = vmul.f32 0.5, %v2994_v8  ;;  %v2996_v61 = vpop.eup %2995 }
 0x346   :  { %v1199_v10 = vmul.f32 %v1187_v30, %v3661_v13  ;;  %v2998_v23 = vpop.eup %2997 }
 0x347   :  { %v1188_v9 = vadd.f32 0.5, %v1186_v18  ;;  %v1202_v22 = vmul.f32 %v2996_v61, %v1180_v24  ;;  %v3000_v19 = vpop.eup %2999  ;;  %v1195_v31 = vmul.f32 0.5, %v2998_v23 }
 0x348   :  { %v3711_v20 = vadd.f32 %v1201_v28, %v1199_v10  ;;  %v1196_v13 = vmul.f32 0.5, %v3000_v19 }
 0x349   :  { %v1200_v27 = vmul.f32 %v1188_v9, %v3665_v35  ;;  %v1197_v43 = vadd.f32 0.5, %v1195_v31 }
 0x34a   :  { %3001 = vtanh.f32 %v3711_v20  ;;  %v1198_v29 = vadd.f32 0.5, %v1196_v13 }
 0x34b   :  { %v3715_v25 = vadd.f32 %v1202_v22, %v1200_v27 }
 0x34d   :  { %3003 = vtanh.f32 %v3715_v25 }
 0x354   :  { %v3002_v7 = vpop.eup %3001 }
 0x355   :  { %v1207_v30 = vmul.f32 %v3002_v7, %v1197_v43 }
 0x357   :  { %v3004_v52 = vpop.eup %3003 }
 0x358   :  { %v1208_v26 = vmul.f32 %v3004_v52, %v1198_v29 }
 0x35a   :  { %v1217_v8 = vpack.c.bf16 %v1208_v26, %v1207_v30 }
 0x35c   :  { %1251 = vmatmul.mubr.bf16.vlgmr.msra.gmra.mrb[12].mxu0 %v1217_v8  ;;  %1294 = vmatmul.mubr.bf16.vlgmr.msra.gmra.mrb[12].mxu1 %v1217_v8 }
 0x35d   :  { %1358 = vmatpush1.bf16.msra.mxu0 %v3325_v36  ;;  %1401 = vmatpush1.bf16.msra.mxu1 %v3337_v38 }
 0x35e   :  { %1359 = vmatprep.subr.bf16.mxu0 %v3332_v37  ;;  %1402 = vmatprep.subr.bf16.mxu1 %v3342_v39 }
 0x35f   :  { %1389 = vmatprep.mubr.bf16.mxu0 %v3158_v1  ;;  %1432 = vmatprep.mubr.bf16.mxu1 %v3158_v1 }
 0x361   :  { %1360 = vmatpush1.bf16.msra.mxu0 %v3349_v40  ;;  %1403 = vmatpush1.bf16.msra.mxu1 %v3362_v42 }
 0x362   :  { %1361 = vmatprep.subr.bf16.mxu0 %v3356_v41  ;;  %1404 = vmatprep.subr.bf16.mxu1 %v3378_v45 }
 0x365   :  { %1362 = vmatpush1.bf16.msra.mxu0 %v3373_v44  ;;  %1405 = vmatpush1.bf16.msra.mxu1 %v3389_v47 }
 0x366   :  { %1363 = vmatprep.subr.bf16.mxu0 %v3383_v46  ;;  %1406 = vmatprep.subr.bf16.mxu1 %v3394_v48 }
 0x369   :  { %1364 = vmatpush1.bf16.msra.mxu0 %v3403_v49  ;;  %1407 = vmatpush1.bf16.msra.mxu1 %v3415_v51 }
 0x36a   :  { %1365 = vmatprep.subr.bf16.mxu0 %v3408_v50  ;;  %1408 = vmatprep.subr.bf16.mxu1 %v3430_v54 }
 0x36d   :  { %1366 = vmatpush1.bf16.msra.mxu0 %v3424_v53  ;;  %1409 = vmatpush1.bf16.msra.mxu1 %v3442_v56 }
 0x36e   :  { %1367 = vmatprep.subr.bf16.mxu0 %v3437_v55  ;;  %1410 = vmatprep.subr.bf16.mxu1 %v3447_v57 }
 0x371   :  { %1368 = vmatpush1.bf16.msra.mxu0 %v3456_v58  ;;  %1411 = vmatpush1.bf16.msra.mxu1 %v3468_v60 }
 0x372   :  { %1369 = vmatprep.subr.bf16.mxu0 %v3463_v59  ;;  %1412 = vmatprep.subr.bf16.mxu1 %v3483_v63 }
 0x375   :  { %1370 = vmatpush1.bf16.msra.mxu0 %v3478_v62  ;;  %1413 = vmatpush1.bf16.msra.mxu1 %v3495_v2 }
 0x376   :  { %1371 = vmatprep.subr.bf16.mxu0 %v3490_v0  ;;  %1414 = vmatprep.subr.bf16.mxu1 %v3500_v3 }
 0x379   :  { %1372 = vmatpush1.bf16.msra.mxu0 %v3509_v4  ;;  %1415 = vmatpush1.bf16.msra.mxu1 %v3516_v5 }
 0x37a   :  { %1496 = vmatprep.subr.bf16.mxu0 %v3312_v33  ;;  %1539 = vmatprep.subr.bf16.mxu1 %v3317_v34 }
 0x42f   :  { %v1252_v36 = vpop.f32.mrb[12].mxu0  ;;  %v1295_v37 = vpop.f32.mrb[12].mxu1 }
 0x430   :  { %v2658_v38 = vadd.f32 %v1252_v36, %v3588_v15  ;;  %v1254_v39 = vpop.f32.mrb[13].mxu0  ;;  %v1297_v40 = vpop.f32.mrb[13].mxu1  ;;  %v2690_v34 = vadd.f32 %v1295_v37, %v3598_v21 }
 0x431   :  { %v2659_v41 = vadd.f32 %v1254_v39, %v3593_v17  ;;  %v1256_v42 = vpop.f32.mrb[14].mxu0  ;;  %v1299_v44 = vpop.f32.mrb[14].mxu1  ;;  %v2691_v61 = vadd.f32 %v1297_v40, %v3607_v6 }
 0x432   :  { %v1312_v45 = vmul.f32 0.5, %v2658_v38  ;;  %v2660_v46 = vadd.f32 %v1256_v42, %v3588_v15  ;;  %v1258_v47 = vpop.f32.mrb[15].mxu0  ;;  %v1301_v35 = vpop.f32.mrb[15].mxu1  ;;  %v2692_v18 = vadd.f32 %v1299_v44, %v3598_v21 }
 0x433   :  { %v1320_v28 = vmul.f32 0.5, %v2659_v41  ;;  %v2661_v33 = vadd.f32 %v1258_v47, %v3593_v17  ;;  %v2693_v9 = vadd.f32 %v1301_v35, %v3607_v6  ;;  %v1330_v19 = vmul.f32 0.5, %v2691_v61 }
 0x434   :  { %3005 = vtanh.f32 %v1312_v45  ;;  %v1313_v10 = vmul.f32 0.5, %v2660_v46 }
 0x435   :  { %3007 = vtanh.f32 %v1320_v28  ;;  %v1321_v24 = vmul.f32 0.5, %v2661_v33  ;;  %v1331_v13 = vmul.f32 0.5, %v2693_v9  ;;  %v3777_v9 = vld [vmem:[%s4257_s2 + $0x8] ss:$16 sps:$4 sm:$0xff]  }
 0x436   :  { %3009 = vtanh.f32 %v1313_v10 }
 0x437   :  { %3011 = vtanh.f32 %v2690_v34 }
 0x438   :  { %3013 = vtanh.f32 %v1321_v24 }
 0x439   :  { %3015 = vtanh.f32 %v2692_v18 }
 0x43a   :  { %3017 = vtanh.f32 %v1330_v19  ;;  %v3803_v19 = vld [vmem:[%s4257_s2 + $0x28] ss:$16 sps:$4 sm:$0xff]  }
 0x43b   :  { %3019 = vtanh.f32 %v1331_v13  ;;  %v3815_v13 = vld [vmem:[%s4257_s2 + $0x4c] ss:$16 sps:$4 sm:$0xff]  }
 0x43e   :  { %v3006_v22 = vpop.eup %3005 }
 0x43f   :  { %v3008_v27 = vpop.eup %3007  ;;  %v1316_v23 = vmul.f32 0.5, %v3006_v22  ;;  %v3783_v22 = vld [vmem:[%s4257_s2 + $0x24] ss:$16 sps:$4 sm:$0xff]  }
 0x440   :  { %v1324_v31 = vmul.f32 0.5, %v3008_v27  ;;  %v3010_v7 = vpop.eup %3009  ;;  %v3789_v27 = vld [vmem:[%s4257_s2 + $0x2c] ss:$16 sps:$4 sm:$0xff]  }
 0x441   :  { %v1318_v43 = vadd.f32 0.5, %v1316_v23  ;;  %v3012_v29 = vpop.eup %3011  ;;  %v1317_v30 = vmul.f32 0.5, %v3010_v7  ;;  %v3797_v23 = vld [vmem:[%s4257_s2 + $0x20] ss:$16 sps:$4 sm:$0xff]  }
 0x442   :  { %v1326_v52 = vadd.f32 0.5, %v1324_v31  ;;  %v3014_v26 = vpop.eup %3013  ;;  %v3809_v31 = vld [vmem:[%s4257_s2 + $0x44] ss:$16 sps:$4 sm:$0xff]   ;;  %v3821_v7 = vld [vmem:[%s4257_s2 + $0x40] ss:$16 sps:$4 sm:$0xff]  }
 0x443   :  { %v1340_v8 = vmul.f32 %v3012_v29, %v1318_v43  ;;  %v1319_v37 = vadd.f32 0.5, %v1317_v30  ;;  %v1325_v38 = vmul.f32 0.5, %v3014_v26  ;;  %v3016_v39 = vpop.eup %3015  ;;  %v3827_v43 = vld [vmem:[%s4257_s2 + $0x48] ss:$16 sps:$4 sm:$0xff]   ;;  %v3833_v29 = vld [vmem:[%s4257_s2 + $0x64] ss:$16 sps:$4 sm:$0xff]  }
 0x444   :  { %v1338_v36 = vmul.f32 %v1326_v52, %v3711_v20  ;;  %v3018_v46 = vpop.eup %3017 }
 0x445   :  { %v1327_v41 = vadd.f32 0.5, %v1325_v38  ;;  %v1341_v42 = vmul.f32 %v3016_v39, %v1319_v37  ;;  %v3020_v47 = vpop.eup %3019  ;;  %v1334_v35 = vmul.f32 0.5, %v3018_v46 }
 0x446   :  { %v3761_v40 = vadd.f32 %v1340_v8, %v1338_v36  ;;  %v1335_v20 = vmul.f32 0.5, %v3020_v47 }
 0x447   :  { %v1339_v44 = vmul.f32 %v1327_v41, %v3715_v25  ;;  %v1336_v33 = vadd.f32 0.5, %v1334_v35  ;;  %v3771_v25 = vld [vmem:[%s4257_s2] ss:$16 sps:$4 sm:$0xff]  }
 0x448   :  { %3021 = vtanh.f32 %v3761_v40  ;;  %v1337_v34 = vadd.f32 0.5, %v1335_v20 }
 0x449   :  { %v3765_v45 = vadd.f32 %v1341_v42, %v1339_v44 }
 0x44b   :  { %3023 = vtanh.f32 %v3765_v45 }
 0x452   :  { %v3022_v28 = vpop.eup %3021 }
 0x453   :  { %v1346_v24 = vmul.f32 %v3022_v28, %v1336_v33 }
 0x455   :  { %v3024_v10 = vpop.eup %3023 }
 0x456   :  { %v1347_v18 = vmul.f32 %v3024_v10, %v1337_v34 }
 0x458   :  { %v1356_v61 = vpack.c.bf16 %v1347_v18, %v1346_v24 }
 0x45a   :  { %1390 = vmatmul.mubr.bf16.vlgmr.msra.gmra.mrb[16].mxu0 %v1356_v61  ;;  %1433 = vmatmul.mubr.bf16.vlgmr.msra.gmra.mrb[16].mxu1 %v1356_v61 }
 0x45b   :  { %1497 = vmatpush1.bf16.msra.mxu0 %v3771_v25  ;;  %1540 = vmatpush1.bf16.msra.mxu1 %v3777_v9 }
 0x45c   :  { %1498 = vmatprep.subr.bf16.mxu0 %v3783_v22  ;;  %1541 = vmatprep.subr.bf16.mxu1 %v3789_v27 }
 0x45d   :  { %1528 = vmatprep.mubr.bf16.mxu0 %v3158_v1  ;;  %1571 = vmatprep.mubr.bf16.mxu1 %v3158_v1 }
 0x45f   :  { %1499 = vmatpush1.bf16.msra.mxu0 %v3797_v23  ;;  %1542 = vmatpush1.bf16.msra.mxu1 %v3803_v19 }
 0x460   :  { %1500 = vmatprep.subr.bf16.mxu0 %v3809_v31  ;;  %1543 = vmatprep.subr.bf16.mxu1 %v3815_v13 }
 0x463   :  { %1501 = vmatpush1.bf16.msra.mxu0 %v3821_v7  ;;  %1544 = vmatpush1.bf16.msra.mxu1 %v3827_v43 }
 0x464   :  { %1502 = vmatprep.subr.bf16.mxu0 %v3833_v29  ;;  %1545 = vmatprep.subr.bf16.mxu1 %v3394_v48  ;;  %v3858_v48 = vld [vmem:[%s4257_s2 + $0x4] ss:$16 sps:$4 sm:$0xff]  }
 0x467   :  { %1503 = vmatpush1.bf16.msra.mxu0 %v3403_v49  ;;  %1546 = vmatpush1.bf16.msra.mxu1 %v3415_v51  ;;  %v3864_v49 = vld [vmem:[%s4257_s2 + $0xc] ss:$16 sps:$4 sm:$0xff]  }
 0x468   :  { %1504 = vmatprep.subr.bf16.mxu0 %v3408_v50  ;;  %1547 = vmatprep.subr.bf16.mxu1 %v3430_v54 }
 0x46b   :  { %1505 = vmatpush1.bf16.msra.mxu0 %v3424_v53  ;;  %1548 = vmatpush1.bf16.msra.mxu1 %v3442_v56 }
 0x46c   :  { %1506 = vmatprep.subr.bf16.mxu0 %v3437_v55  ;;  %1549 = vmatprep.subr.bf16.mxu1 %v3447_v57 }
 0x46f   :  { %1507 = vmatpush1.bf16.msra.mxu0 %v3456_v58  ;;  %1550 = vmatpush1.bf16.msra.mxu1 %v3468_v60 }
 0x470   :  { %1508 = vmatprep.subr.bf16.mxu0 %v3463_v59  ;;  %1551 = vmatprep.subr.bf16.mxu1 %v3483_v63 }
 0x473   :  { %1509 = vmatpush1.bf16.msra.mxu0 %v3478_v62  ;;  %1552 = vmatpush1.bf16.msra.mxu1 %v3495_v2 }
 0x474   :  { %1510 = vmatprep.subr.bf16.mxu0 %v3490_v0  ;;  %1553 = vmatprep.subr.bf16.mxu1 %v3500_v3 }
 0x477   :  { %1511 = vmatpush1.bf16.msra.mxu0 %v3509_v4  ;;  %1554 = vmatpush1.bf16.msra.mxu1 %v3516_v5 }
 0x478   :  { %1635 = vmatprep.subr.bf16.mxu0 %v3858_v48  ;;  %1678 = vmatprep.subr.bf16.mxu1 %v3864_v49 }
 0x52d   :  { %v1391_v50 = vpop.f32.mrb[16].mxu0  ;;  %v1434_v51 = vpop.f32.mrb[16].mxu1 }
 0x52e   :  { %v2662_v53 = vadd.f32 %v1391_v50, %v3588_v15  ;;  %v1393_v54 = vpop.f32.mrb[17].mxu0  ;;  %v1436_v55 = vpop.f32.mrb[17].mxu1  ;;  %v2694_v3 = vadd.f32 %v1434_v51, %v3598_v21 }
 0x52f   :  { %v2663_v56 = vadd.f32 %v1393_v54, %v3593_v17  ;;  %v1395_v57 = vpop.f32.mrb[18].mxu0  ;;  %v1438_v58 = vpop.f32.mrb[18].mxu1  ;;  %v2695_v30 = vadd.f32 %v1436_v55, %v3607_v6 }
 0x530   :  { %v1451_v59 = vmul.f32 0.5, %v2662_v53  ;;  %v2664_v60 = vadd.f32 %v1395_v57, %v3588_v15  ;;  %v1397_v62 = vpop.f32.mrb[19].mxu0  ;;  %v1440_v63 = vpop.f32.mrb[19].mxu1  ;;  %v2696_v52 = vadd.f32 %v1438_v58, %v3598_v21 }
 0x531   :  { %v1459_v0 = vmul.f32 0.5, %v2663_v56  ;;  %v2665_v2 = vadd.f32 %v1397_v62, %v3593_v17  ;;  %v2697_v26 = vadd.f32 %v1440_v63, %v3607_v6  ;;  %v1469_v38 = vmul.f32 0.5, %v2695_v30  ;;  %v3935_v30 = vld [vmem:[%s4257_s2 + $0x88] ss:$16 sps:$4 sm:$0xff]  }
 0x532   :  { %3025 = vtanh.f32 %v1451_v59  ;;  %v1452_v4 = vmul.f32 0.5, %v2664_v60 }
 0x533   :  { %3027 = vtanh.f32 %v1459_v0  ;;  %v1460_v5 = vmul.f32 0.5, %v2665_v2  ;;  %v1470_v41 = vmul.f32 0.5, %v2697_v26  ;;  %v3905_v2 = vld [vmem:[%s4257_s2 + $0x60] ss:$16 sps:$4 sm:$0xff]   ;;  %v3941_v26 = vld [vmem:[%s4257_s2 + $0xa4] ss:$16 sps:$4 sm:$0xff]  }
 0x534   :  { %3029 = vtanh.f32 %v1452_v4  ;;  %v3917_v4 = vld [vmem:[%s4257_s2 + $0x84] ss:$16 sps:$4 sm:$0xff]  }
 0x535   :  { %3031 = vtanh.f32 %v2694_v3  ;;  %v3911_v3 = vld [vmem:[%s4257_s2 + $0x68] ss:$16 sps:$4 sm:$0xff]  }
 0x536   :  { %3033 = vtanh.f32 %v1460_v5  ;;  %v3923_v5 = vld [vmem:[%s4257_s2 + $0x8c] ss:$16 sps:$4 sm:$0xff]  }
 0x537   :  { %3035 = vtanh.f32 %v2696_v52  ;;  %v3929_v52 = vld [vmem:[%s4257_s2 + $0x80] ss:$16 sps:$4 sm:$0xff]  }
 0x538   :  { %3037 = vtanh.f32 %v1469_v38  ;;  %v3965_v38 = vld [vmem:[%s4257_s2 + $0xc4] ss:$16 sps:$4 sm:$0xff]  }
 0x539   :  { %3039 = vtanh.f32 %v1470_v41  ;;  %v3977_v41 = vld [vmem:[%s4257_s2 + $0xc0] ss:$16 sps:$4 sm:$0xff]  }
 0x53c   :  { %v3026_v8 = vpop.eup %3025 }
 0x53d   :  { %v3028_v36 = vpop.eup %3027  ;;  %v1455_v37 = vmul.f32 0.5, %v3026_v8  ;;  %v3947_v8 = vld [vmem:[%s4257_s2 + $0xac] ss:$16 sps:$4 sm:$0xff]  }
 0x53e   :  { %v1463_v39 = vmul.f32 0.5, %v3028_v36  ;;  %v3030_v42 = vpop.eup %3029  ;;  %v3953_v36 = vld [vmem:[%s4257_s2 + $0xa0] ss:$16 sps:$4 sm:$0xff]  }
 0x53f   :  { %v1457_v44 = vadd.f32 0.5, %v1455_v37  ;;  %v3032_v46 = vpop.eup %3031  ;;  %v1456_v35 = vmul.f32 0.5, %v3030_v42  ;;  %v3959_v37 = vld [vmem:[%s4257_s2 + $0xa8] ss:$16 sps:$4 sm:$0xff]  }
 0x540   :  { %v1465_v47 = vadd.f32 0.5, %v1463_v39  ;;  %v3034_v20 = vpop.eup %3033  ;;  %v3971_v39 = vld [vmem:[%s4257_s2 + $0xcc] ss:$16 sps:$4 sm:$0xff]   ;;  %v3983_v42 = vld [vmem:[%s4257_s2 + $0xc8] ss:$16 sps:$4 sm:$0xff]  }
 0x541   :  { %v1479_v28 = vmul.f32 %v3032_v46, %v1457_v44  ;;  %v1458_v34 = vadd.f32 0.5, %v1456_v35  ;;  %v1464_v10 = vmul.f32 0.5, %v3034_v20  ;;  %v3036_v24 = vpop.eup %3035  ;;  %v3989_v44 = vld [vmem:[%s4257_s2 + $0xe4] ss:$16 sps:$4 sm:$0xff]   ;;  %v3995_v46 = vld [vmem:[%s4257_s2 + $0xec] ss:$16 sps:$4 sm:$0xff]  }
 0x542   :  { %v1477_v33 = vmul.f32 %v1465_v47, %v3761_v40  ;;  %v3038_v54 = vpop.eup %3037  ;;  %v4001_v47 = vld [vmem:[%s4257_s2 + $0xe0] ss:$16 sps:$4 sm:$0xff]   ;;  %v4007_v35 = vld [vmem:[%s4257_s2 + $0xe8] ss:$16 sps:$4 sm:$0xff]  }
 0x543   :  { %v1466_v61 = vadd.f32 0.5, %v1464_v10  ;;  %v1480_v50 = vmul.f32 %v3036_v24, %v1458_v34  ;;  %v3040_v55 = vpop.eup %3039  ;;  %v1473_v56 = vmul.f32 0.5, %v3038_v54 }
 0x544   :  { %v3876_v18 = vadd.f32 %v1479_v28, %v1477_v33  ;;  %v1474_v40 = vmul.f32 0.5, %v3040_v55 }
 0x545   :  { %v1478_v51 = vmul.f32 %v1466_v61, %v3765_v45  ;;  %v1475_v58 = vadd.f32 0.5, %v1473_v56  ;;  %v3899_v45 = vld [vmem:[%s4257_s2 + $0x6c] ss:$16 sps:$4 sm:$0xff]  }
 0x546   :  { %3041 = vtanh.f32 %v3876_v18  ;;  %v1476_v59 = vadd.f32 0.5, %v1474_v40 }
 0x547   :  { %v3880_v53 = vadd.f32 %v1480_v50, %v1478_v51 }
 0x549   :  { %3043 = vtanh.f32 %v3880_v53 }
 0x550   :  { %v3042_v57 = vpop.eup %3041 }
 0x551   :  { %v1485_v62 = vmul.f32 %v3042_v57, %v1475_v58 }
 0x553   :  { %v3044_v60 = vpop.eup %3043 }
 0x554   :  { %v1486_v63 = vmul.f32 %v3044_v60, %v1476_v59 }
 0x556   :  { %v1495_v0 = vpack.c.bf16 %v1486_v63, %v1485_v62 }
 0x558   :  { %1529 = vmatmul.mubr.bf16.vlgmr.msra.gmra.mrb[20].mxu0 %v1495_v0  ;;  %1572 = vmatmul.mubr.bf16.vlgmr.msra.gmra.mrb[20].mxu1 %v1495_v0 }
 0x559   :  { %1636 = vmatpush1.bf16.msra.mxu0 %v3771_v25  ;;  %1679 = vmatpush1.bf16.msra.mxu1 %v3777_v9 }
 0x55a   :  { %1637 = vmatprep.subr.bf16.mxu0 %v3783_v22  ;;  %1680 = vmatprep.subr.bf16.mxu1 %v3789_v27 }
 0x55b   :  { %1667 = vmatprep.mubr.bf16.mxu0 %v3158_v1  ;;  %1710 = vmatprep.mubr.bf16.mxu1 %v3158_v1 }
 0x55d   :  { %1638 = vmatpush1.bf16.msra.mxu0 %v3797_v23  ;;  %1681 = vmatpush1.bf16.msra.mxu1 %v3803_v19 }
 0x55e   :  { %1639 = vmatprep.subr.bf16.mxu0 %v3809_v31  ;;  %1682 = vmatprep.subr.bf16.mxu1 %v3815_v13 }
 0x561   :  { %1640 = vmatpush1.bf16.msra.mxu0 %v3821_v7  ;;  %1683 = vmatpush1.bf16.msra.mxu1 %v3827_v43 }
 0x562   :  { %1641 = vmatprep.subr.bf16.mxu0 %v3833_v29  ;;  %1684 = vmatprep.subr.bf16.mxu1 %v3899_v45 }
 0x565   :  { %1642 = vmatpush1.bf16.msra.mxu0 %v3905_v2  ;;  %1685 = vmatpush1.bf16.msra.mxu1 %v3911_v3 }
 0x566   :  { %1643 = vmatprep.subr.bf16.mxu0 %v3917_v4  ;;  %1686 = vmatprep.subr.bf16.mxu1 %v3923_v5 }
 0x569   :  { %1644 = vmatpush1.bf16.msra.mxu0 %v3929_v52  ;;  %1687 = vmatpush1.bf16.msra.mxu1 %v3935_v30 }
 0x56a   :  { %1645 = vmatprep.subr.bf16.mxu0 %v3941_v26  ;;  %1688 = vmatprep.subr.bf16.mxu1 %v3947_v8 }
 0x56d   :  { %1646 = vmatpush1.bf16.msra.mxu0 %v3953_v36  ;;  %1689 = vmatpush1.bf16.msra.mxu1 %v3959_v37 }
 0x56e   :  { %1647 = vmatprep.subr.bf16.mxu0 %v3965_v38  ;;  %1690 = vmatprep.subr.bf16.mxu1 %v3971_v39 }
 0x571   :  { %1648 = vmatpush1.bf16.msra.mxu0 %v3977_v41  ;;  %1691 = vmatpush1.bf16.msra.mxu1 %v3983_v42 }
 0x572   :  { %1649 = vmatprep.subr.bf16.mxu0 %v3989_v44  ;;  %1692 = vmatprep.subr.bf16.mxu1 %v3995_v46 }
 0x575   :  { %1650 = vmatpush1.bf16.msra.mxu0 %v4001_v47  ;;  %1693 = vmatpush1.bf16.msra.mxu1 %v4007_v35 }
 0x576   :  { %1774 = vmatprep.subr.bf16.mxu0 %v3858_v48  ;;  %1817 = vmatprep.subr.bf16.mxu1 %v3864_v49 }
 0x62b   :  { %v1530_v20 = vpop.f32.mrb[20].mxu0  ;;  %v1573_v28 = vpop.f32.mrb[20].mxu1 }
 0x62c   :  { %v2666_v33 = vadd.f32 %v1530_v20, %v3588_v15  ;;  %v1532_v34 = vpop.f32.mrb[21].mxu0  ;;  %v1575_v10 = vpop.f32.mrb[21].mxu1  ;;  %v2698_v49 = vadd.f32 %v1573_v28, %v3598_v21 }
 0x62d   :  { %v2667_v24 = vadd.f32 %v1532_v34, %v3593_v17  ;;  %v1534_v61 = vpop.f32.mrb[22].mxu0  ;;  %v1577_v50 = vpop.f32.mrb[22].mxu1  ;;  %v2699_v60 = vadd.f32 %v1575_v10, %v3607_v6 }
 0x62e   :  { %v1590_v51 = vmul.f32 0.5, %v2666_v33  ;;  %v2668_v54 = vadd.f32 %v1534_v61, %v3588_v15  ;;  %v1536_v55 = vpop.f32.mrb[23].mxu0  ;;  %v1579_v56 = vpop.f32.mrb[23].mxu1  ;;  %v2700_v59 = vadd.f32 %v1577_v50, %v3598_v21 }
 0x62f   :  { %v1598_v40 = vmul.f32 0.5, %v2667_v24  ;;  %v2669_v48 = vadd.f32 %v1536_v55, %v3593_v17  ;;  %v2701_v62 = vadd.f32 %v1579_v56, %v3607_v6  ;;  %v1608_v33 = vmul.f32 0.5, %v2699_v60 }
 0x630   :  { %3045 = vtanh.f32 %v1590_v51  ;;  %v1591_v57 = vmul.f32 0.5, %v2668_v54 }
 0x631   :  { %3047 = vtanh.f32 %v1598_v40  ;;  %v1599_v58 = vmul.f32 0.5, %v2669_v48  ;;  %v1609_v24 = vmul.f32 0.5, %v2701_v62 }
 0x632   :  { %3049 = vtanh.f32 %v1591_v57 }
 0x633   :  { %3051 = vtanh.f32 %v2698_v49 }
 0x634   :  { %3053 = vtanh.f32 %v1599_v58 }
 0x635   :  { %3055 = vtanh.f32 %v2700_v59 }
 0x636   :  { %3057 = vtanh.f32 %v1608_v33 }
 0x637   :  { %3059 = vtanh.f32 %v1609_v24 }
 0x63a   :  { %v3046_v63 = vpop.eup %3045 }
 0x63b   :  { %v3048_v0 = vpop.eup %3047  ;;  %v1594_v20 = vmul.f32 0.5, %v3046_v63 }
 0x63c   :  { %v1602_v34 = vmul.f32 0.5, %v3048_v0  ;;  %v3050_v28 = vpop.eup %3049 }
 0x63d   :  { %v1596_v61 = vadd.f32 0.5, %v1594_v20  ;;  %v3052_v51 = vpop.eup %3051  ;;  %v1595_v55 = vmul.f32 0.5, %v3050_v28 }
 0x63e   :  { %v1604_v54 = vadd.f32 0.5, %v1602_v34  ;;  %v3054_v40 = vpop.eup %3053 }
 0x63f   :  { %v1618_v50 = vmul.f32 %v3052_v51, %v1596_v61  ;;  %v1597_v10 = vadd.f32 0.5, %v1595_v55  ;;  %v1603_v49 = vmul.f32 0.5, %v3054_v40  ;;  %v3056_v56 = vpop.eup %3055 }
 0x640   :  { %v1616_v48 = vmul.f32 %v1604_v54, %v3876_v18  ;;  %v3058_v63 = vpop.eup %3057 }
 0x641   :  { %v1605_v58 = vadd.f32 0.5, %v1603_v49  ;;  %v1619_v59 = vmul.f32 %v3056_v56, %v1597_v10  ;;  %v3060_v0 = vpop.eup %3059  ;;  %v1612_v20 = vmul.f32 0.5, %v3058_v63 }
 0x642   :  { %v4021_v57 = vadd.f32 %v1618_v50, %v1616_v48  ;;  %v1613_v18 = vmul.f32 0.5, %v3060_v0 }
 0x643   :  { %v1617_v60 = vmul.f32 %v1605_v58, %v3880_v53  ;;  %v1614_v34 = vadd.f32 0.5, %v1612_v20 }
 0x644   :  { %3061 = vtanh.f32 %v4021_v57  ;;  %v1615_v24 = vadd.f32 0.5, %v1613_v18 }
 0x645   :  { %v4025_v62 = vadd.f32 %v1619_v59, %v1617_v60 }
 0x647   :  { %3063 = vtanh.f32 %v4025_v62 }
 0x64e   :  { %v3062_v33 = vpop.eup %3061 }
 0x64f   :  { %v1624_v61 = vmul.f32 %v3062_v33, %v1614_v34 }
 0x651   :  { %v3064_v28 = vpop.eup %3063 }
 0x652   :  { %v1625_v51 = vmul.f32 %v3064_v28, %v1615_v24 }
 0x654   :  { %v1634_v54 = vpack.c.bf16 %v1625_v51, %v1624_v61 }
 0x656   :  { %1668 = vmatmul.mubr.bf16.vlgmr.msra.gmra.mrb[24].mxu0 %v1634_v54  ;;  %1711 = vmatmul.mubr.bf16.vlgmr.msra.gmra.mrb[24].mxu1 %v1634_v54 }
 0x657   :  { %1775 = vmatpush1.bf16.msra.mxu0 %v3771_v25  ;;  %1818 = vmatpush1.bf16.msra.mxu1 %v3777_v9  ;;  %v2883_v25 = vld [vmem:[%s4259_s4 + $0x4] ss:$16 sps:$4 sm:$0xff]   ;;  %v2889_v9 = vld [vmem:[%s4259_s4 + $0xc] ss:$16 sps:$4 sm:$0xff]  }
 0x658   :  { %1776 = vmatprep.subr.bf16.mxu0 %v3783_v22  ;;  %1819 = vmatprep.subr.bf16.mxu1 %v3789_v27 }
 0x659   :  { %1806 = vmatprep.mubr.bf16.mxu0 %v3158_v1  ;;  %1849 = vmatprep.mubr.bf16.mxu1 %v3158_v1 }
 0x65b   :  { %1777 = vmatpush1.bf16.msra.mxu0 %v3797_v23  ;;  %1820 = vmatpush1.bf16.msra.mxu1 %v3803_v19 }
 0x65c   :  { %1778 = vmatprep.subr.bf16.mxu0 %v3809_v31  ;;  %1821 = vmatprep.subr.bf16.mxu1 %v3815_v13 }
 0x65f   :  { %1779 = vmatpush1.bf16.msra.mxu0 %v3821_v7  ;;  %1822 = vmatpush1.bf16.msra.mxu1 %v3827_v43 }
 0x660   :  { %1780 = vmatprep.subr.bf16.mxu0 %v3833_v29  ;;  %1823 = vmatprep.subr.bf16.mxu1 %v3899_v45 }
 0x663   :  { %1781 = vmatpush1.bf16.msra.mxu0 %v3905_v2  ;;  %1824 = vmatpush1.bf16.msra.mxu1 %v3911_v3 }
 0x664   :  { %1782 = vmatprep.subr.bf16.mxu0 %v3917_v4  ;;  %1825 = vmatprep.subr.bf16.mxu1 %v3923_v5 }
 0x667   :  { %1783 = vmatpush1.bf16.msra.mxu0 %v3929_v52  ;;  %1826 = vmatpush1.bf16.msra.mxu1 %v3935_v30 }
 0x668   :  { %1784 = vmatprep.subr.bf16.mxu0 %v3941_v26  ;;  %1827 = vmatprep.subr.bf16.mxu1 %v3947_v8 }
 0x66b   :  { %1785 = vmatpush1.bf16.msra.mxu0 %v3953_v36  ;;  %1828 = vmatpush1.bf16.msra.mxu1 %v3959_v37 }
 0x66c   :  { %1786 = vmatprep.subr.bf16.mxu0 %v3965_v38  ;;  %1829 = vmatprep.subr.bf16.mxu1 %v3971_v39 }
 0x66f   :  { %1787 = vmatpush1.bf16.msra.mxu0 %v3977_v41  ;;  %1830 = vmatpush1.bf16.msra.mxu1 %v3983_v42 }
 0x670   :  { %1788 = vmatprep.subr.bf16.mxu0 %v3989_v44  ;;  %1831 = vmatprep.subr.bf16.mxu1 %v3995_v46 }
 0x673   :  { %1789 = vmatpush1.bf16.msra.mxu0 %v4001_v47  ;;  %1832 = vmatpush1.bf16.msra.mxu1 %v4007_v35 }
 0x674   :  { %2118 = vmatprep.subr.bf16.mxu0 %v2883_v25  ;;  %2161 = vmatprep.subr.bf16.mxu1 %v2889_v9  ;;  %v2887_v9 = vld [vmem:[%s4259_s4 + $0x8] ss:$16 sps:$4 sm:$0xff]  }
 0x729   :  { %v1669_v22 = vpop.f32.mrb[24].mxu0  ;;  %v1712_v27 = vpop.f32.mrb[24].mxu1 }
 0x72a   :  { %v2670_v23 = vadd.f32 %v1669_v22, %v3588_v15  ;;  %v1671_v19 = vpop.f32.mrb[25].mxu0  ;;  %v1714_v31 = vpop.f32.mrb[25].mxu1  ;;  %v2702_v5 = vadd.f32 %v1712_v27, %v3598_v21  ;;  %v2886_v27 = vld [vmem:[%s4259_s4 + $0x24] ss:$16 sps:$4 sm:$0xff]  }
 0x72b   :  { %v2671_v13 = vadd.f32 %v1671_v19, %v3593_v17  ;;  %v1673_v7 = vpop.f32.mrb[26].mxu0  ;;  %v1716_v43 = vpop.f32.mrb[26].mxu1  ;;  %v2703_v8 = vadd.f32 %v1714_v31, %v3607_v6  ;;  %v2884_v19 = vld [vmem:[%s4259_s4 + $0x20] ss:$16 sps:$4 sm:$0xff]   ;;  %v2893_v31 = vld [vmem:[%s4259_s4 + $0x28] ss:$16 sps:$4 sm:$0xff]  }
 0x72c   :  { %v1729_v29 = vmul.f32 0.5, %v2670_v23  ;;  %v2672_v53 = vadd.f32 %v1673_v7, %v3588_v15  ;;  %v1675_v45 = vpop.f32.mrb[27].mxu0  ;;  %v1718_v2 = vpop.f32.mrb[27].mxu1  ;;  %v2704_v26 = vadd.f32 %v1716_v43, %v3598_v21  ;;  %v2895_v23 = vld [vmem:[%s4259_s4 + $0x2c] ss:$16 sps:$4 sm:$0xff]  }
 0x72d   :  { %v1737_v3 = vmul.f32 0.5, %v2671_v13  ;;  %v2673_v4 = vadd.f32 %v1675_v45, %v3593_v17  ;;  %v2705_v36 = vadd.f32 %v1718_v2, %v3607_v6  ;;  %v1747_v41 = vmul.f32 0.5, %v2703_v8  ;;  %v2892_v13 = vld [vmem:[%s4259_s4 + $0x44] ss:$16 sps:$4 sm:$0xff]   ;;  %v2901_v7 = vld [vmem:[%s4259_s4 + $0x4c] ss:$16 sps:$4 sm:$0xff]  }
 0x72e   :  { %3065 = vtanh.f32 %v1729_v29  ;;  %v1730_v52 = vmul.f32 0.5, %v2672_v53  ;;  %v2890_v43 = vld [vmem:[%s4259_s4 + $0x40] ss:$16 sps:$4 sm:$0xff]   ;;  %v2899_v29 = vld [vmem:[%s4259_s4 + $0x48] ss:$16 sps:$4 sm:$0xff]  }
 0x72f   :  { %3067 = vtanh.f32 %v1737_v3  ;;  %v1738_v30 = vmul.f32 0.5, %v2673_v4  ;;  %v1748_v44 = vmul.f32 0.5, %v2705_v36  ;;  %v2898_v53 = vld [vmem:[%s4259_s4 + $0x64] ss:$16 sps:$4 sm:$0xff]   ;;  %v2896_v45 = vld [vmem:[%s4259_s4 + $0x60] ss:$16 sps:$4 sm:$0xff]  }
 0x730   :  { %3069 = vtanh.f32 %v1730_v52  ;;  %v2905_v2 = vld [vmem:[%s4259_s4 + $0x68] ss:$16 sps:$4 sm:$0xff]   ;;  %v2904_v3 = vld [vmem:[%s4259_s4 + $0x84] ss:$16 sps:$4 sm:$0xff]   ;;  %v2913_v4 = vld [vmem:[%s4259_s4 + $0x8c] ss:$16 sps:$4 sm:$0xff]  }
 0x731   :  { %3071 = vtanh.f32 %v2702_v5  ;;  %v2902_v5 = vld [vmem:[%s4259_s4 + $0x80] ss:$16 sps:$4 sm:$0xff]   ;;  %v2911_v52 = vld [vmem:[%s4259_s4 + $0x88] ss:$16 sps:$4 sm:$0xff]  }
 0x732   :  { %3073 = vtanh.f32 %v1738_v30  ;;  %v2910_v30 = vld [vmem:[%s4259_s4 + $0xa4] ss:$16 sps:$4 sm:$0xff]   ;;  %v2908_v8 = vld [vmem:[%s4259_s4 + $0xa0] ss:$16 sps:$4 sm:$0xff]   ;;  %v2917_v36 = vld [vmem:[%s4259_s4 + $0xa8] ss:$16 sps:$4 sm:$0xff]  }
 0x733   :  { %3075 = vtanh.f32 %v2704_v26  ;;  %v2919_v26 = vld [vmem:[%s4259_s4 + $0xac] ss:$16 sps:$4 sm:$0xff]  }
 0x734   :  { %3077 = vtanh.f32 %v1747_v41  ;;  %v2923_v41 = vld [vmem:[%s4259_s4 + $0xc8] ss:$16 sps:$4 sm:$0xff]  }
 0x735   :  { %3079 = vtanh.f32 %v1748_v44  ;;  %v2928_v44 = vld [vmem:[%s4259_s4 + $0xec] ss:$16 sps:$4 sm:$0xff]  }
 0x738   :  { %v3066_v37 = vpop.eup %3065 }
 0x739   :  { %v3068_v38 = vpop.eup %3067  ;;  %v1733_v39 = vmul.f32 0.5, %v3066_v37  ;;  %v2916_v37 = vld [vmem:[%s4259_s4 + $0xc4] ss:$16 sps:$4 sm:$0xff]  }
 0x73a   :  { %v1741_v42 = vmul.f32 0.5, %v3068_v38  ;;  %v3070_v46 = vpop.eup %3069  ;;  %v2925_v38 = vld [vmem:[%s4259_s4 + $0xcc] ss:$16 sps:$4 sm:$0xff]  }
 0x73b   :  { %v1735_v47 = vadd.f32 0.5, %v1733_v39  ;;  %v3072_v35 = vpop.eup %3071  ;;  %v1734_v40 = vmul.f32 0.5, %v3070_v46  ;;  %v2914_v39 = vld [vmem:[%s4259_s4 + $0xc0] ss:$16 sps:$4 sm:$0xff]  }
 0x73c   :  { %v1743_v55 = vadd.f32 0.5, %v1741_v42  ;;  %v3074_v50 = vpop.eup %3073  ;;  %v2922_v42 = vld [vmem:[%s4259_s4 + $0xe4] ss:$16 sps:$4 sm:$0xff]   ;;  %v2920_v46 = vld [vmem:[%s4259_s4 + $0xe0] ss:$16 sps:$4 sm:$0xff]  }
 0x73d   :  { %v1757_v48 = vmul.f32 %v3072_v35, %v1735_v47  ;;  %v1736_v49 = vadd.f32 0.5, %v1734_v40  ;;  %v1742_v56 = vmul.f32 0.5, %v3074_v50  ;;  %v3076_v58 = vpop.eup %3075  ;;  %v2926_v47 = vld [vmem:[%s4259_s4 + $0xe8] ss:$16 sps:$4 sm:$0xff]   ;;  %v3159_v40 = vmov 0.0  }
 0x73e   :  { %v1755_v10 = vmul.f32 %v1743_v55, %v4021_v57  ;;  %v3078_v18 = vpop.eup %3077  ;;  %v3157_v35 = vld [vmem:[%s4256_s0 + $0x38] sm:$0xff]   ;;  %v2929_v55 = vld [vmem:[%s4260_s6] sm:$0xff]   ;;  %v2930_v50 = vld [vmem:[%s4260_s6 + $0x8] sm:$0xff]  }
 0x73f   :  { %v1744_v60 = vadd.f32 0.5, %v1742_v56  ;;  %v1758_v63 = vmul.f32 %v3076_v58, %v1736_v49  ;;  %v3080_v33 = vpop.eup %3079  ;;  %v1751_v34 = vmul.f32 0.5, %v3078_v18  ;;  %v2933_v49 = vld [vmem:[%s4260_s6 + $0x20] sm:$0xff]   ;;  %v2934_v56 = vld [vmem:[%s4260_s6 + $0x28] sm:$0xff]   ;;  %v2935_v58 = vld [vmem:[%s4260_s6 + $0x30] sm:$0xff]  }
 0x740   :  { %v4075_v59 = vadd.f32 %v1757_v48, %v1755_v10  ;;  %v1752_v57 = vmul.f32 0.5, %v3080_v33  ;;  %v2931_v48 = vld [vmem:[%s4260_s6 + $0x10] sm:$0xff]   ;;  %v2932_v10 = vld [vmem:[%s4260_s6 + $0x18] sm:$0xff]  }
 0x741   :  { %v1756_v0 = vmul.f32 %v1744_v60, %v4025_v62  ;;  %v1753_v28 = vadd.f32 0.5, %v1751_v34  ;;  %v2881_v62 = vld [vmem:[%s4259_s4] ss:$16 sps:$4 sm:$0xff]   ;;  %v2936_v60 = vld [vmem:[%s4260_s6 + $0x38] sm:$0xff]  }
 0x742   :  { %3081 = vtanh.f32 %v4075_v59  ;;  %v1754_v61 = vadd.f32 0.5, %v1752_v57  ;;  %v2939_v18 = vld [vmem:[%s4261_s7 + $0x10] sm:$0xff]   ;;  %v2940_v33 = vld [vmem:[%s4261_s7 + $0x18] sm:$0xff]   ;;  %v2941_v34 = vld [vmem:[%s4261_s7 + $0x20] sm:$0xff]  }
 0x743   :  { %v4079_v20 = vadd.f32 %v1758_v63, %v1756_v0  ;;  %v2937_v63 = vld [vmem:[%s4261_s7] sm:$0xff]   ;;  %v2938_v0 = vld [vmem:[%s4261_s7 + $0x8] sm:$0xff]  }
 0x744   :  { %v2942_v57 = vld [vmem:[%s4261_s7 + $0x28] sm:$0xff]  }
 0x745   :  { %3083 = vtanh.f32 %v4079_v20 }
 0x74c   :  { %v3082_v24 = vpop.eup %3081 }
 0x74d   :  { %v1763_v54 = vmul.f32 %v3082_v24, %v1753_v28  ;;  %v2943_v24 = vld [vmem:[%s4261_s7 + $0x30] sm:$0xff]   ;;  %v2944_v28 = vld [vmem:[%s4261_s7 + $0x38] sm:$0xff]  }
 0x74f   :  { %v3084_v51 = vpop.eup %3083 }
 0x750   :  { %v1764_v25 = vmul.f32 %v3084_v51, %v1754_v61 }
 0x752   :  { %v1773_v22 = vpack.c.bf16 %v1764_v25, %v1763_v54 }
 0x754   :  { %1807 = vmatmul.mubr.bf16.vlgmr.msra.gmra.mrb[28].mxu0 %v1773_v22  ;;  %1850 = vmatmul.mubr.bf16.vlgmr.msra.gmra.mrb[28].mxu1 %v1773_v22 }
 0x755   :  { %2119 = vmatpush1.bf16.msra.mxu0 %v2881_v62  ;;  %2162 = vmatpush1.bf16.msra.mxu1 %v2887_v9 }
 0x756   :  { %2120 = vmatprep.subr.bf16.mxu0 %v2886_v27  ;;  %2163 = vmatprep.subr.bf16.mxu1 %v2895_v23 }
 0x757   :  { %2150 = vmatprep.mubr.bf16.mxu0 %v3158_v1  ;;  %2193 = vmatprep.mubr.bf16.mxu1 %v3158_v1  ;;  %v2907_v1 = vld [vmem:[%s4259_s4 + $0x6c] ss:$16 sps:$4 sm:$0xff]  }
 0x759   :  { %2121 = vmatpush1.bf16.msra.mxu0 %v2884_v19  ;;  %2164 = vmatpush1.bf16.msra.mxu1 %v2893_v31 }
 0x75a   :  { %2122 = vmatprep.subr.bf16.mxu0 %v2892_v13  ;;  %2165 = vmatprep.subr.bf16.mxu1 %v2901_v7 }
 0x75d   :  { %2123 = vmatpush1.bf16.msra.mxu0 %v2890_v43  ;;  %2166 = vmatpush1.bf16.msra.mxu1 %v2899_v29 }
 0x75e   :  { %2124 = vmatprep.subr.bf16.mxu0 %v2898_v53  ;;  %2167 = vmatprep.subr.bf16.mxu1 %v2907_v1 }
 0x761   :  { %2125 = vmatpush1.bf16.msra.mxu0 %v2896_v45  ;;  %2168 = vmatpush1.bf16.msra.mxu1 %v2905_v2 }
 0x762   :  { %2126 = vmatprep.subr.bf16.mxu0 %v2904_v3  ;;  %2169 = vmatprep.subr.bf16.mxu1 %v2913_v4 }
 0x765   :  { %2127 = vmatpush1.bf16.msra.mxu0 %v2902_v5  ;;  %2170 = vmatpush1.bf16.msra.mxu1 %v2911_v52 }
 0x766   :  { %2128 = vmatprep.subr.bf16.mxu0 %v2910_v30  ;;  %2171 = vmatprep.subr.bf16.mxu1 %v2919_v26 }
 0x769   :  { %2129 = vmatpush1.bf16.msra.mxu0 %v2908_v8  ;;  %2172 = vmatpush1.bf16.msra.mxu1 %v2917_v36 }
 0x76a   :  { %2130 = vmatprep.subr.bf16.mxu0 %v2916_v37  ;;  %2173 = vmatprep.subr.bf16.mxu1 %v2925_v38 }
 0x76d   :  { %2131 = vmatpush1.bf16.msra.mxu0 %v2914_v39  ;;  %2174 = vmatpush1.bf16.msra.mxu1 %v2923_v41 }
 0x76e   :  { %2132 = vmatprep.subr.bf16.mxu0 %v2922_v42  ;;  %2175 = vmatprep.subr.bf16.mxu1 %v2928_v44 }
 0x771   :  { %2133 = vmatpush1.bf16.msra.mxu0 %v2920_v46  ;;  %2176 = vmatpush1.bf16.msra.mxu1 %v2926_v47 }
 0x772   :  { %2626 = vmatprep.subr.bf16.mxu1 %v3159_v40  ;;  %2606 = vmatprep.subr.bf16.mxu0 %v3159_v40 }
 0x774   :  { %2151 = vmatmul.mubr.bf16.vlgmr.msra.gmra.mrb[32].mxu0 %v3157_v35  ;;  %2194 = vmatmul.mubr.bf16.vlgmr.msra.gmra.mrb[32].mxu1 %v3157_v35 }
 0x775   :  { %2627 = vmatpush3.bf16.msra.mxu1 %v2929_v55  ;;  %2642 = vmatprep.mubr.msk.bf16.mxu1 %vm3160_vm0, %v3159_v40 }
 0x776   :  { %2628 = vmatprep.subr.bf16.mxu1 %v3159_v40  ;;  %2622 = vmatprep.mubr.msk.bf16.mxu0 %vm3160_vm0, %v3159_v40 }
 0x777   :  { %2607 = vmatpush3.bf16.msra.mxu0 %v2937_v63 }
 0x778   :  { %2608 = vmatprep.subr.bf16.mxu0 %v3159_v40 }
 0x779   :  { %2629 = vmatpush3.bf16.msra.mxu1 %v2930_v50 }
 0x77a   :  { %2630 = vmatprep.subr.bf16.mxu1 %v3159_v40 }
 0x77b   :  { %2609 = vmatpush3.bf16.msra.mxu0 %v2938_v0 }
 0x77c   :  { %2610 = vmatprep.subr.bf16.mxu0 %v3159_v40 }
 0x77d   :  { %2631 = vmatpush3.bf16.msra.mxu1 %v2931_v48 }
 0x77e   :  { %2632 = vmatprep.subr.bf16.mxu1 %v3159_v40 }
 0x77f   :  { %2611 = vmatpush3.bf16.msra.mxu0 %v2939_v18 }
 0x780   :  { %2612 = vmatprep.subr.bf16.mxu0 %v3159_v40 }
 0x781   :  { %2633 = vmatpush3.bf16.msra.mxu1 %v2932_v10 }
 0x782   :  { %2634 = vmatprep.subr.bf16.mxu1 %v3159_v40 }
 0x783   :  { %2613 = vmatpush3.bf16.msra.mxu0 %v2940_v33 }
 0x784   :  { %2614 = vmatprep.subr.bf16.mxu0 %v3159_v40 }
 0x785   :  { %2635 = vmatpush3.bf16.msra.mxu1 %v2933_v49 }
 0x786   :  { %2636 = vmatprep.subr.bf16.mxu1 %v3159_v40 }
 0x787   :  { %2615 = vmatpush3.bf16.msra.mxu0 %v2941_v34 }
 0x788   :  { %2616 = vmatprep.subr.bf16.mxu0 %v3159_v40 }
 0x789   :  { %2637 = vmatpush3.bf16.msra.mxu1 %v2934_v56 }
 0x78a   :  { %2638 = vmatprep.subr.bf16.mxu1 %v3159_v40 }
 0x78b   :  { %2617 = vmatpush3.bf16.msra.mxu0 %v2942_v57 }
 0x78c   :  { %2618 = vmatprep.subr.bf16.mxu0 %v3159_v40 }
 0x78d   :  { %2639 = vmatpush3.bf16.msra.mxu1 %v2935_v58 }
 0x78e   :  { %2640 = vmatprep.subr.bf16.mxu1 %v3159_v40 }
 0x78f   :  { %2619 = vmatpush3.bf16.msra.mxu0 %v2943_v24 }
 0x790   :  { %2620 = vmatprep.subr.bf16.mxu0 %v3159_v40  ;;  %v1936_v40 = vld [vmem:[%s4262_s5] sm:$0xf] }
 0x791   :  { %2641 = vmatpush3.bf16.msra.mxu1 %v2936_v60  ;;  %v1949_v10 = vrot.slane %v1936_v40, %v125_v16  ;;  %v1945_v56 = vrot.slane %v1936_v40, %v121_v14 }
 0x793   :  { %2621 = vmatpush3.bf16.msra.mxu0 %v2944_v28 }
 0x827   :  { %v1808_v61 = vpop.f32.mrb[28].mxu0  ;;  %v1851_v51 = vpop.f32.mrb[28].mxu1 }
 0x828   :  { %v2674_v54 = vadd.f32 %v1808_v61, %v3588_v15  ;;  %v1810_v25 = vpop.f32.mrb[29].mxu0  ;;  %v1853_v62 = vpop.f32.mrb[29].mxu1  ;;  %v2706_v29 = vadd.f32 %v1851_v51, %v3598_v21 }
 0x829   :  { %v2675_v9 = vadd.f32 %v1810_v25, %v3593_v17  ;;  %v1812_v22 = vpop.f32.mrb[30].mxu0  ;;  %v1855_v27 = vpop.f32.mrb[30].mxu1  ;;  %v2707_v2 = vadd.f32 %v1853_v62, %v3607_v6 }
 0x82a   :  { %v1868_v23 = vmul.f32 0.5, %v2674_v54  ;;  %v2676_v19 = vadd.f32 %v1812_v22, %v3588_v15  ;;  %v1814_v31 = vpop.f32.mrb[31].mxu0  ;;  %v1857_v13 = vpop.f32.mrb[31].mxu1  ;;  %v2708_v45 = vadd.f32 %v1855_v27, %v3598_v21  ;;  %v1953_v27 = vrot.slane %v1936_v40, %v129_v32 }
 0x82b   :  { %v1876_v7 = vmul.f32 0.5, %v2675_v9  ;;  %v2677_v43 = vadd.f32 %v1814_v31, %v3593_v17  ;;  %v1886_v15 = vmul.f32 0.5, %v2707_v2  ;;  %v2709_v3 = vadd.f32 %v1857_v13, %v3607_v6 }
 0x82c   :  { %3085 = vtanh.f32 %v1868_v23  ;;  %v1869_v53 = vmul.f32 0.5, %v2676_v19 }
 0x82d   :  { %3087 = vtanh.f32 %v1876_v7  ;;  %v1877_v1 = vmul.f32 0.5, %v2677_v43  ;;  %v1887_v30 = vmul.f32 0.5, %v2709_v3 }
 0x82e   :  { %3089 = vtanh.f32 %v1869_v53 }
 0x82f   :  { %3091 = vtanh.f32 %v2706_v29 }
 0x830   :  { %3093 = vtanh.f32 %v1877_v1 }
 0x831   :  { %3095 = vtanh.f32 %v2708_v45 }
 0x832   :  { %3097 = vtanh.f32 %v1886_v15 }
 0x833   :  { %3099 = vtanh.f32 %v1887_v30 }
 0x836   :  { %v3086_v4 = vpop.eup %3085 }
 0x837   :  { %v3088_v5 = vpop.eup %3087  ;;  %v1872_v17 = vmul.f32 0.5, %v3086_v4 }
 0x838   :  { %v1880_v52 = vmul.f32 0.5, %v3088_v5  ;;  %v3090_v26 = vpop.eup %3089 }
 0x839   :  { %v1874_v8 = vadd.f32 0.5, %v1872_v17  ;;  %v3092_v36 = vpop.eup %3091  ;;  %v1873_v38 = vmul.f32 0.5, %v3090_v26 }
 0x83a   :  { %v1882_v37 = vadd.f32 0.5, %v1880_v52  ;;  %v3094_v21 = vpop.eup %3093 }
 0x83b   :  { %v1896_v39 = vmul.f32 %v3092_v36, %v1874_v8  ;;  %v1875_v42 = vadd.f32 0.5, %v1873_v38  ;;  %v1881_v44 = vmul.f32 0.5, %v3094_v21  ;;  %v3096_v46 = vpop.eup %3095 }
 0x83c   :  { %v1894_v41 = vmul.f32 %v1882_v37, %v4075_v59  ;;  %v3098_v50 = vpop.eup %3097  ;;  %v1941_v59 = vrot.slane %v1936_v40, %v117_v12 }
 0x83d   :  { %v1883_v47 = vadd.f32 0.5, %v1881_v44  ;;  %v1897_v35 = vmul.f32 %v3096_v46, %v1875_v42  ;;  %v1890_v49 = vmul.f32 0.5, %v3098_v50  ;;  %v3100_v58 = vpop.eup %3099 }
 0x83e   :  { %v1898_v6 = vadd.f32 %v1896_v39, %v1894_v41  ;;  %v1891_v57 = vmul.f32 0.5, %v3100_v58 }
 0x83f   :  { %v1895_v55 = vmul.f32 %v1883_v47, %v4079_v20  ;;  %v1892_v34 = vadd.f32 0.5, %v1890_v49 }
 0x840   :  { %3101 = vtanh.f32 %v1898_v6  ;;  %v1893_v23 = vadd.f32 0.5, %v1891_v57 }
 0x841   :  { %v1899_v48 = vadd.f32 %v1897_v35, %v1895_v55 }
 0x843   :  { %3103 = vtanh.f32 %v1899_v48 }
 0x847   :  { %v2152_v60 = vpop.f32.mrb[32].mxu0  ;;  %v2195_v20 = vpop.f32.mrb[32].mxu1 }
 0x848   :  { %v2153_v63 = vadd.f32 %v2152_v60, %v1941_v59  ;;  %v2154_v0 = vpop.f32.mrb[33].mxu0  ;;  %v2196_v18 = vadd.f32 %v2195_v20, %v1949_v10  ;;  %v2197_v33 = vpop.f32.mrb[33].mxu1 }
 0x849   :  { %v2155_v24 = vadd.f32 %v2154_v0, %v1945_v56  ;;  %v2156_v28 = vpop.f32.mrb[34].mxu0  ;;  %v2199_v61 = vpop.f32.mrb[34].mxu1  ;;  %v2198_v43 = vadd.f32 %v2197_v33, %v1953_v27  ;;  %v2587_v0 = vld [vmem:[%s4263_s8] ss:$0 sm:$0xff] }
 0x84a   :  { %v3102_v12 = vpop.eup %3101  ;;  %v2204_v51 = vmul.f32 0.5, %v2153_v63  ;;  %v2157_v54 = vadd.f32 %v2156_v28, %v1941_v59  ;;  %v2158_v16 = vpop.f32.mrb[35].mxu0  ;;  %3105 = vtanh.f32 %v2196_v18  ;;  %v2200_v31 = vadd.f32 %v2199_v61, %v1949_v10 }
 0x84b   :  { %v2201_v25 = vpop.f32.mrb[35].mxu1  ;;  %v1902_v62 = vmul.f32 %v3102_v12, %v1892_v34  ;;  %v2212_v9 = vmul.f32 0.5, %v2155_v24  ;;  %v2159_v14 = vadd.f32 %v2158_v16, %v1945_v56  ;;  %v2222_v1 = vmul.f32 0.5, %v2198_v43 }
 0x84c   :  { %3107 = vtanh.f32 %v2204_v51  ;;  %v2205_v22 = vmul.f32 0.5, %v2157_v54  ;;  %v2202_v53 = vadd.f32 %v2201_v25, %v1953_v27 }
 0x84d   :  { %3109 = vtanh.f32 %v2212_v9  ;;  %v2213_v19 = vmul.f32 0.5, %v2159_v14  ;;  %v3104_v13 = vpop.eup %3103 }
 0x84e   :  { %3111 = vtanh.f32 %v2205_v22  ;;  %v1903_v7 = vmul.f32 %v3104_v13, %v1893_v23  ;;  %v2223_v15 = vmul.f32 0.5, %v2202_v53 }
 0x84f   :  { %3113 = vtanh.f32 %v2213_v19 }
 0x850   :  { %3115 = vtanh.f32 %v2200_v31  ;;  %v2240_v29 = vpack.c.bf16 %v1903_v7, %v1902_v62 }
 0x851   :  { %3117 = vtanh.f32 %v2222_v1 }
 0x852   :  { %2643 = vmatmul.mubr.bf16.vlgmr.msra.gmra.mrb[36].mxu1 %v2240_v29  ;;  %3119 = vtanh.f32 %v2223_v15 }
 0x854   :  { %v3106_v45 = vpop.eup %3105 }
 0x856   :  { %v3108_v2 = vpop.eup %3107 }
 0x857   :  { %v3110_v3 = vpop.eup %3109  ;;  %v2208_v11 = vmul.f32 0.5, %v3108_v2 }
 0x858   :  { %v3112_v32 = vpop.eup %3111  ;;  %v2216_v4 = vmul.f32 0.5, %v3110_v3 }
 0x859   :  { %v3114_v5 = vpop.eup %3113  ;;  %v2210_v17 = vadd.f32 0.5, %v2208_v11  ;;  %v2209_v52 = vmul.f32 0.5, %v3112_v32 }
 0x85a   :  { %v2218_v30 = vadd.f32 0.5, %v2216_v4  ;;  %v2217_v26 = vmul.f32 0.5, %v3114_v5  ;;  %v3116_v8 = vpop.eup %3115 }
 0x85b   :  { %v2211_v36 = vadd.f32 0.5, %v2209_v52  ;;  %v2232_v37 = vmul.f32 %v3106_v45, %v2210_v17  ;;  %v3118_v46 = vpop.eup %3117 }
 0x85c   :  { %v2230_v38 = vmul.f32 0.0, %v2218_v30  ;;  %v2219_v21 = vadd.f32 0.5, %v2217_v26  ;;  %v3120_v6 = vpop.eup %3119  ;;  %v2226_v47 = vmul.f32 0.5, %v3118_v46 }
 0x85d   :  { %v2233_v39 = vmul.f32 %v3116_v8, %v2211_v36  ;;  %v2227_v35 = vmul.f32 0.5, %v3120_v6 }
 0x85e   :  { %v2231_v41 = vmul.f32 0.0, %v2219_v21  ;;  %v2234_v42 = vadd.f32 %v2232_v37, %v2230_v38  ;;  %v2228_v55 = vadd.f32 0.5, %v2226_v47 }
 0x85f   :  { %v2229_v48 = vadd.f32 0.5, %v2227_v35 }
 0x860   :  { %3121 = vtanh.f32 %v2234_v42  ;;  %v2235_v44 = vadd.f32 %v2233_v39, %v2231_v41 }
 0x862   :  { %3123 = vtanh.f32 %v2235_v44 }
 0x86a   :  { %v3122_v40 = vpop.eup %3121 }
 0x86b   :  { %v2238_v50 = vmul.f32 %v3122_v40, %v2228_v55 }
 0x86c   :  { %v3124_v59 = vpop.eup %3123 }
 0x86d   :  { %v2239_v10 = vmul.f32 %v3124_v59, %v2229_v48 }
 0x86f   :  { %v2257_v49 = vpack.c.bf16 %v2239_v10, %v2238_v50 }
 0x871   :  { %2623 = vmatmul.mubr.bf16.vlgmr.msra.gmra.mrb[36].mxu0 %v2257_v49 }
 0x925   :  { %v2445_v56 = vpop.f32.mrb[36].mxu1 }
 0x926   :  { %v2644_v58 = vpop.f32.mrb[37].mxu1 }
 0x927   :  { %v2448_v60 = vpop.f32.mrb[38].mxu1 }
 0x928   :  { %v2645_v20 = vpop.f32.mrb[39].mxu1 }
 0x944   :  { %v2356_v63 = vpop.f32.mrb[36].mxu0 }
 0x945   :  { %v2446_v18 = vadd.f32 %v2445_v56, %v2356_v63  ;;  %v2624_v33 = vpop.f32.mrb[37].mxu0 }
 0x946   :  { %v2359_v34 = vpop.f32.mrb[38].mxu0 }
 0x947   :  { %v2459_v57 = vadd.f32 %v2587_v0, %v2446_v18  ;;  %v2449_v24 = vadd.f32 %v2448_v60, %v2359_v34  ;;  %v2625_v28 = vpop.f32.mrb[39].mxu0 }
 0x949   :  { %2461 = vst [vmem:[%s4264_s9] sm:$0xff] %v2459_v57  ;;  %v2460_v61 = vadd.f32 %v2587_v0, %v2449_v24 }
 0x94b   :  { %2462 = vst [vmem:[%s4264_s9 + $0x8] sm:$0xff] %v2460_v61 }

</bundles_post_ra>
